<compile_context>
chip_gen: v5e
topology: v5e:2x2
jax: 0.10.0
libtpu: 0.0.40
codegen_flags: <defaults>
</compile_context>

<pallas_src>
import functools

import jax
import jax.numpy as jnp
import numpy as np
from jax.experimental import pallas as pl
from jax.experimental.pallas import tpu as pltpu


# ----------------------------------------------------------------------------
# Fused kernel: one grid step == full GIN forward for one batch element.
# ----------------------------------------------------------------------------
def _gin_fused_kernel(*refs, layer_cfgs, nd, nx, ny, pmax, padl):
    """refs = (alpha_ref, w_0, s_0, ..., w_{L-1}, s_{L-1}, x_ref, o_ref, xbuf)

    alpha_ref : SMEM [nb]                     mixing coefficient per batch elem
    w_l       : SMEM [nb, cout*cin*k^3]       conv weights of layer l
    s_l       : SMEM [nb, cout]               per-(b, oc) shift of layer l
    x_ref     : VMEM block [nc, nd, nx*ny]    lane-dense input (batch squeezed)
    o_ref     : VMEM block [nc, nd, nx*ny]    lane-dense output
    xbuf      : VMEM scratch [cmax, nd+2*pmax, nx*ny + 2*padl]  zero margins
    """
    n_layer = len(layer_cfgs)
    alpha_ref = refs[0]
    w_refs = [refs[1 + 2 * li] for li in range(n_layer)]
    s_refs = [refs[2 + 2 * li] for li in range(n_layer)]
    x_ref = refs[1 + 2 * n_layer]
    o_ref = refs[2 + 2 * n_layer]
    xbuf = refs[3 + 2 * n_layer]

    nxy = nx * ny
    H = nd + 2 * pmax                    # padded depth rows
    L = nxy + 2 * padl                   # padded lane width
    b = pl.program_id(0)
    nc = x_ref.shape[0]
    cmax = xbuf.shape[0]

    # ---- cached dy-edge masks (at most 2 for k=3), full padded width --------
    _masks = {}

    def dy_mask(dy):
        if dy not in _masks:
            lane = jax.lax.broadcasted_iota(jnp.int32, (1, 1, L), 2)
            interior = (lane >= padl) & (lane < padl + nxy)
            ypos = (lane - padl) % ny
            _masks[dy] = interior & (ypos + dy >= 0) & (ypos + dy < ny)
        return _masks[dy]

    # ---- zero only the margins (interior is always fully overwritten) -------
    if padl > 0:
        strip = jnp.zeros((cmax, H, padl), jnp.float32)
        xbuf[:, :, 0:padl] = strip
        xbuf[:, :, padl + nxy:] = strip
    if pmax > 0:
        row = jnp.zeros((cmax, pmax, nxy), jnp.float32)
        xbuf[:, 0:pmax, padl:padl + nxy] = row
        xbuf[:, H - pmax:, padl:padl + nxy] = row

    # ---- stage the input into the lane-aligned interior window --------------
    xbuf[0:nc, pmax:pmax + nd, padl:padl + nxy] = x_ref[...].astype(jnp.float32)

    # ---- chain of grouped conv3d + shift (+ leaky-relu) layers ---------------
    for (cin, cout, k, use_act), w_ref, s_ref in zip(layer_cfgs, w_refs, s_refs):
        p = k // 2
        xp = xbuf[0:cin, :, :]                       # [cin, H, L], zero margins
        # init accumulators with the per-(b, oc) shift (saves a final add)
        acc = [jnp.full((nd, nxy), s_ref[b, oc], jnp.float32)
               for oc in range(cout)]

        for dy in range(-p, p + 1):
            if dy == 0:
                xdy = xp
            else:
                # lane shift on the XLU; x-row wrap handled by one cached mask
                xdy = pltpu.roll(xp, (-dy) % L, axis=2)
                xdy = jnp.where(dy_mask(dy), xdy, 0.0)
            for dx in range(-p, p + 1):
                xs = xdy if dx == 0 else pltpu.roll(xdy, (-dx * ny) % L, axis=2)
                for dd in range(-p, p + 1):
                    # lane-aligned slice of the pre-shifted slab
                    tap = xs[:, pmax + dd:pmax + dd + nd, padl:padl + nxy]
                    kd, kx, ky = dd + p, dx + p, dy + p
                    for oc in range(cout):
                        for ci in range(cin):
                            widx = (((oc * cin + ci) * k + kd) * k + kx) * k + ky
                            acc[oc] = acc[oc] + w_ref[b, widx] * tap[ci]

        for oc in range(cout):
            y = acc[oc]
            if use_act:
                y = jnp.where(y >= 0.0, y, 0.01 * y)  # F.leaky_relu slope 0.01
            xbuf[oc, pmax:pmax + nd, padl:padl + nxy] = y

    # ---- alpha-mix with the original input + Frobenius renormalisation ------
    cout_last = layer_cfgs[-1][1]
    a = alpha_ref[b]
    x_in = x_ref[...].astype(jnp.float32)                      # [nc, nd, nxy]
    x_gin = xbuf[0:cout_last, pmax:pmax + nd, padl:padl + nxy]
    mixed = a * x_gin + (1.0 - a) * x_in
    in_frob = jnp.sqrt(jnp.sum(x_in * x_in))
    self_frob = jnp.sqrt(jnp.sum(mixed * mixed))
    o_ref[...] = (mixed * (in_frob / (self_frob + 1e-5))).astype(o_ref.dtype)


# ----------------------------------------------------------------------------
# Wrapper: lane-dense view, single pallas_call, per-batch grid.
# ----------------------------------------------------------------------------
def gin_group_conv_pallas(x_in, alphas, layers):
    """x_in: [nb, nc, nd, nx, ny]; alphas: [nb];
    layers: list of dicts {cin, cout, k, use_act, w:[nb, cout*cin*k^3], shift:[nb, cout]}.
    """
    nb, nc, nd, nx, ny = x_in.shape
    nxy = nx * ny
    cmax = max(max(l["cin"], l["cout"]) for l in layers)
    pmax = max(l["k"] // 2 for l in layers)
    # lane margin: >= pmax*ny and a multiple of 128 so the interior is aligned
    padl = 0 if pmax == 0 else ((pmax * ny + 127) // 128) * 128
    H = nd + 2 * pmax
    L = nxy + 2 * padl
    assert layers[0]["cin"] == nc and layers[-1]["cout"] == nc, \
        "frob-mix requires out_channel == in_channel == nc"

    layer_cfgs = tuple((l["cin"], l["cout"], l["k"], l["use_act"]) for l in layers)
    kernel = functools.partial(_gin_fused_kernel, layer_cfgs=layer_cfgs,
                               nd=nd, nx=nx, ny=ny, pmax=pmax, padl=padl)

    # lane-dense HBM view: merge (nx, ny) into one trailing axis (256 = 2*128)
    x_flat = x_in.reshape(nb, nc, nd, nxy).astype(jnp.float32)

    smem = pl.BlockSpec(memory_space=pltpu.MemorySpace.SMEM)
    params, in_specs = [], [smem]                      # alphas
    for l in layers:
        params += [l["w"].astype(jnp.float32), l["shift"].astype(jnp.float32)]
        in_specs += [smem, smem]
    blk = pl.BlockSpec((None, nc, nd, nxy), lambda bb: (bb, 0, 0, 0))
    in_specs.append(blk)

    # VMEM budget: scratch + double-buffered (in + out) blocks + headroom.
    xbuf_bytes = cmax * H * L * 4
    blk_bytes = nc * nd * nxy * 4
    vmem_limit = int(min(max(xbuf_bytes + 4 * blk_bytes + (8 << 20), 32 << 20),
                         112 << 20))

    out = pl.pallas_call(
        kernel,
        out_shape=jax.ShapeDtypeStruct((nb, nc, nd, nxy), jnp.float32),
        grid=(nb,),
        in_specs=in_specs,
        out_specs=pl.BlockSpec((None, nc, nd, nxy), lambda bb: (bb, 0, 0, 0)),
        scratch_shapes=[pltpu.VMEM((cmax, H, L), jnp.float32)],
        compiler_params=pltpu.CompilerParams(
            dimension_semantics=("parallel",),         # v7x: 2 TCs split batch
            vmem_limit_bytes=vmem_limit),
    )(alphas.astype(jnp.float32), *params, x_flat)
    return out.reshape(nb, nc, nd, nx, ny)


# ----------------------------------------------------------------------------
# Parameter generation (mirrors the module's random weights / kernel sizes).
# ----------------------------------------------------------------------------
def make_gin_params(key, *, nb, in_channel, interm_channel, out_channel,
                    n_layer, scale_pool):
    keys = jax.random.split(key, 3 * n_layer + 1)
    alphas = jax.random.uniform(keys[0], (nb,), dtype=jnp.float32)
    chans = [in_channel] + [interm_channel] * (n_layer - 1) + [out_channel]
    layers = []
    for li in range(n_layer):
        cin, cout = chans[li], chans[li + 1]
        # kernel size drawn at trace time (mirrors torch.randint); k is static
        # per layer, so this builder cannot be jit-ed with a traced key.
        k_idx = int(jax.random.randint(keys[1 + 3 * li], (), 0, len(scale_pool)))
        k = int(scale_pool[k_idx])
        w = jax.random.normal(keys[2 + 3 * li],
                              (nb, cout * cin * k * k * k), dtype=jnp.float32)
        shift = jax.random.normal(keys[3 + 3 * li], (nb, cout), dtype=jnp.float32)
        layers.append(dict(cin=cin, cout=cout, k=k, use_act=(li != n_layer - 1),
                           w=w, shift=shift))
    return alphas, layers


def gin_group_conv_forward(x_in, *, key, in_channel=1, interm_channel=1,
                           out_channel=1, n_layer=4, scale_pool=(1, 3)):
    """Module-equivalent entry point (GINGroupConv.forward)."""
    nb, nc = x_in.shape[0], x_in.shape[1]
    assert nc == in_channel
    alphas, layers = make_gin_params(
        key, nb=nb, in_channel=in_channel, interm_channel=interm_channel,
        out_channel=out_channel, n_layer=n_layer, scale_pool=scale_pool)
    return gin_group_conv_pallas(x_in, alphas, layers)


# ----------------------------------------------------------------------------
# Pure-JAX reference (same params, independent conv path) for validation.
# ----------------------------------------------------------------------------
def gin_group_conv_reference(x_in, alphas, layers):
    nb, nc, nd, nx, ny = x_in.shape
    x = x_in.astype(jnp.float32)
    for l in layers:
        cin, cout, k = l["cin"], l["cout"], l["k"]
        p = k // 2
        ker = l["w"].reshape(nb * cout, cin, k, k, k)
        y = jax.lax.conv_general_dilated(
            x.reshape(1, nb * cin, nd, nx, ny), ker,
            window_strides=(1, 1, 1), padding=[(p, p)] * 3,
            dimension_numbers=("NCDHW", "OIDHW", "NCDHW"),
            feature_group_count=nb, precision=jax.lax.Precision.HIGHEST)
        y = y.reshape(nb, cout, nd, nx, ny) + l["shift"].reshape(nb, cout, 1, 1, 1)
        if l["use_act"]:
            y = jnp.where(y >= 0.0, y, 0.01 * y)
        x = y
    al = alphas.reshape(nb, 1, 1, 1, 1)
    mixed = al * x + (1.0 - al) * x_in.astype(jnp.float32)
    in_frob = jnp.sqrt(jnp.sum(x_in.astype(jnp.float32) ** 2,
                               axis=(1, 2, 3, 4), keepdims=True))
    self_frob = jnp.sqrt(jnp.sum(mixed ** 2, axis=(1, 2, 3, 4), keepdims=True))
    return mixed * (1.0 / (self_frob + 1e-5)) * in_frob


if __name__ == "__main__":
    root = jax.random.PRNGKey(0)
    k_in, k_a, k_b, k_c = jax.random.split(root, 4)

    # [nb, nc, nd, nx, ny] -- small shapes consistent with the module
    nb, nc, nd, nx, ny = 2, 1, 4, 16, 16
    x_in = jax.random.normal(k_in, (nb, nc, nd, nx, ny), dtype=jnp.float32)

    # config 1: module default (random k per layer from scale_pool=(1, 3));
    # configs 2/3: forced k=1 / k=3 pools so both tap paths are exercised.
    for pkey, pool in [(k_a, (1, 3)), (k_b, (1,)), (k_c, (3,))]:
        alphas, layers = make_gin_params(
            pkey, nb=nb, in_channel=nc, interm_channel=2, out_channel=nc,
            n_layer=4, scale_pool=pool)
        out = jax.block_until_ready(gin_group_conv_pallas(x_in, alphas, layers))
        assert out.shape == x_in.shape
        ref = gin_group_conv_reference(x_in, alphas, layers)
        np.testing.assert_allclose(np.asarray(out), np.asarray(ref),
                                   rtol=2e-3, atol=2e-3)

    print("KERNEL_OK")
</pallas_src>

<mosaic_0001>
module attributes {stable_mosaic.version = 11 : i64} {
  func.func @_gin_fused_kernel(%arg0: i32, %arg1: memref<2xf32, #tpu.memory_space<smem>>, %arg2: memref<2x2xf32, #tpu.memory_space<smem>>, %arg3: memref<2x2xf32, #tpu.memory_space<smem>>, %arg4: memref<2x4xf32, #tpu.memory_space<smem>>, %arg5: memref<2x2xf32, #tpu.memory_space<smem>>, %arg6: memref<2x4xf32, #tpu.memory_space<smem>>, %arg7: memref<2x2xf32, #tpu.memory_space<smem>>, %arg8: memref<2x54xf32, #tpu.memory_space<smem>>, %arg9: memref<2x1xf32, #tpu.memory_space<smem>>, %arg10: memref<1x1x4x256xf32, #tpu.memory_space<vmem>>, %arg11: memref<1x1x4x256xf32, #tpu.memory_space<vmem>>, %arg12: memref<2x6x512xf32, #tpu.memory_space<vmem>>) attributes {dimension_semantics = [#tpu.dimension_semantics<parallel>], iteration_bounds = array<i64: 2>, scalar_prefetch = 0 : i64, scratch_operands = 1 : i64, tpu.core_type = #tpu.core_type<tc>, window_params = [{transform_indices = @transform_0, window_bounds = array<i64: 2>}, {transform_indices = @transform_1, window_bounds = array<i64: 2, 2>}, {transform_indices = @transform_2, window_bounds = array<i64: 2, 2>}, {transform_indices = @transform_3, window_bounds = array<i64: 2, 4>}, {transform_indices = @transform_4, window_bounds = array<i64: 2, 2>}, {transform_indices = @transform_5, window_bounds = array<i64: 2, 4>}, {transform_indices = @transform_6, window_bounds = array<i64: 2, 2>}, {transform_indices = @transform_7, window_bounds = array<i64: 2, 54>}, {transform_indices = @transform_8, window_bounds = array<i64: 2, 1>}, {transform_indices = @transform_9, window_bounds = array<i64: 1, 1, 4, 256>}, {transform_indices = @transform_10, window_bounds = array<i64: 1, 1, 4, 256>}]} {
    %cst = arith.constant 0.000000e+00 : f32
    %0 = vector.broadcast %cst : f32 to vector<2x6x128xf32>
    %c0 = arith.constant 0 : index
    %c0_0 = arith.constant 0 : index
    %c0_1 = arith.constant 0 : index
    %1 = vector.load %arg12[%c0, %c0_0, %c0_1] : memref<2x6x512xf32, #tpu.memory_space<vmem>>, vector<2x6x128xf32>
    tpu.vector_store %arg12[%c0, %c0_0, %c0_1], %0 {strides = array<i32>} : memref<2x6x512xf32, #tpu.memory_space<vmem>>, vector<2x6x128xf32>,
    %c0_2 = arith.constant 0 : index
    %c0_3 = arith.constant 0 : index
    %c384 = arith.constant 384 : index
    %2 = vector.load %arg12[%c0_2, %c0_3, %c384] : memref<2x6x512xf32, #tpu.memory_space<vmem>>, vector<2x6x128xf32>
    tpu.vector_store %arg12[%c0_2, %c0_3, %c384], %0 {strides = array<i32>} : memref<2x6x512xf32, #tpu.memory_space<vmem>>, vector<2x6x128xf32>,
    %cst_4 = arith.constant 0.000000e+00 : f32
    %3 = vector.broadcast %cst_4 : f32 to vector<2x1x256xf32>
    %c0_5 = arith.constant 0 : index
    %c0_6 = arith.constant 0 : index
    %c128 = arith.constant 128 : index
    %4 = vector.load %arg12[%c0_5, %c0_6, %c128] : memref<2x6x512xf32, #tpu.memory_space<vmem>>, vector<2x1x256xf32>
    tpu.vector_store %arg12[%c0_5, %c0_6, %c128], %3 {strides = array<i32>} : memref<2x6x512xf32, #tpu.memory_space<vmem>>, vector<2x1x256xf32>,
    %c0_7 = arith.constant 0 : index
    %c5 = arith.constant 5 : index
    %c128_8 = arith.constant 128 : index
    %5 = vector.load %arg12[%c0_7, %c5, %c128_8] : memref<2x6x512xf32, #tpu.memory_space<vmem>>, vector<2x1x256xf32>
    tpu.vector_store %arg12[%c0_7, %c5, %c128_8], %3 {strides = array<i32>} : memref<2x6x512xf32, #tpu.memory_space<vmem>>, vector<2x1x256xf32>,
    %c0_9 = arith.constant 0 : index
    %c0_10 = arith.constant 0 : index
    %c0_11 = arith.constant 0 : index
    %c0_12 = arith.constant 0 : index
    %6 = vector.load %arg10[%c0_9, %c0_10, %c0_11, %c0_12] : memref<1x1x4x256xf32, #tpu.memory_space<vmem>>, vector<1x1x4x256xf32>
    %7 = vector.shape_cast %6 : vector<1x1x4x256xf32> to vector<1x4x256xf32>
    %c0_13 = arith.constant 0 : index
    %c1 = arith.constant 1 : index
    %c128_14 = arith.constant 128 : index
    %8 = vector.load %arg12[%c0_13, %c1, %c128_14] : memref<2x6x512xf32, #tpu.memory_space<vmem>>, vector<1x4x256xf32>
    tpu.vector_store %arg12[%c0_13, %c1, %c128_14], %7 {strides = array<i32>} : memref<2x6x512xf32, #tpu.memory_space<vmem>>, vector<1x4x256xf32>,
    %c0_15 = arith.constant 0 : index
    %c0_16 = arith.constant 0 : index
    %c0_17 = arith.constant 0 : index
    %9 = vector.load %arg12[%c0_15, %c0_16, %c0_17] : memref<2x6x512xf32, #tpu.memory_space<vmem>>, vector<1x6x512xf32>
    %10 = arith.index_cast %arg0 : i32 to index
    %c0_18 = arith.constant 0 : index
    %11 = memref.load %arg3[%10, %c0_18] : memref<2x2xf32, #tpu.memory_space<smem>>
    %12 = vector.broadcast %11 : f32 to vector<4x256xf32>
    %13 = arith.index_cast %arg0 : i32 to index
    %c1_19 = arith.constant 1 : index
    %14 = memref.load %arg3[%13, %c1_19] : memref<2x2xf32, #tpu.memory_space<smem>>
    %15 = vector.broadcast %14 : f32 to vector<4x256xf32>
    %16 = vector.extract_strided_slice %9 {offsets = [0, 1, 128], sizes = [1, 4, 256], strides = [1, 1, 1]} : vector<1x6x512xf32> to vector<1x4x256xf32>
    %17 = arith.index_cast %arg0 : i32 to index
    %c0_20 = arith.constant 0 : index
    %18 = memref.load %arg2[%17, %c0_20] : memref<2x2xf32, #tpu.memory_space<smem>>
    %19 = vector.shape_cast %16 : vector<1x4x256xf32> to vector<4x256xf32>
    %20 = vector.broadcast %18 : f32 to vector<4x256xf32>
    %21 = arith.mulf %20, %19 : vector<4x256xf32>
    %22 = arith.addf %12, %21 : vector<4x256xf32>
    %23 = arith.index_cast %arg0 : i32 to index
    %c1_21 = arith.constant 1 : index
    %24 = memref.load %arg2[%23, %c1_21] : memref<2x2xf32, #tpu.memory_space<smem>>
    %25 = vector.shape_cast %16 : vector<1x4x256xf32> to vector<4x256xf32>
    %26 = vector.broadcast %24 : f32 to vector<4x256xf32>
    %27 = arith.mulf %26, %25 : vector<4x256xf32>
    %28 = arith.addf %15, %27 : vector<4x256xf32>
    %cst_22 = arith.constant 0.000000e+00 : f32
    %29 = vector.broadcast %cst_22 : f32 to vector<4x256xf32>
    %30 = arith.cmpf oge, %22, %29 : vector<4x256xf32>
    %cst_23 = arith.constant 0.00999999977 : f32
    %31 = vector.broadcast %cst_23 : f32 to vector<4x256xf32>
    %32 = arith.mulf %31, %22 : vector<4x256xf32>
    %33 = arith.select %30, %22, %32 : vector<4x256xi1>, vector<4x256xf32>
    %c0_24 = arith.constant 0 : index
    %c1_25 = arith.constant 1 : index
    %c128_26 = arith.constant 128 : index
    %34 = vector.load %arg12[%c0_24, %c1_25, %c128_26] : memref<2x6x512xf32, #tpu.memory_space<vmem>>, vector<1x4x256xf32>
    %35 = vector.shape_cast %34 : vector<1x4x256xf32> to vector<4x256xf32>
    %36 = vector.shape_cast %33 : vector<4x256xf32> to vector<1x4x256xf32>
    tpu.vector_store %arg12[%c0_24, %c1_25, %c128_26], %36 {strides = array<i32>} : memref<2x6x512xf32, #tpu.memory_space<vmem>>, vector<1x4x256xf32>,
    %cst_27 = arith.constant 0.000000e+00 : f32
    %37 = vector.broadcast %cst_27 : f32 to vector<4x256xf32>
    %38 = arith.cmpf oge, %28, %37 : vector<4x256xf32>
    %cst_28 = arith.constant 0.00999999977 : f32
    %39 = vector.broadcast %cst_28 : f32 to vector<4x256xf32>
    %40 = arith.mulf %39, %28 : vector<4x256xf32>
    %41 = arith.select %38, %28, %40 : vector<4x256xi1>, vector<4x256xf32>
    %c1_29 = arith.constant 1 : index
    %c1_30 = arith.constant 1 : index
    %c128_31 = arith.constant 128 : index
    %42 = vector.load %arg12[%c1_29, %c1_30, %c128_31] : memref<2x6x512xf32, #tpu.memory_space<vmem>>, vector<1x4x256xf32>
    %43 = vector.shape_cast %42 : vector<1x4x256xf32> to vector<4x256xf32>
    %44 = vector.shape_cast %41 : vector<4x256xf32> to vector<1x4x256xf32>
    tpu.vector_store %arg12[%c1_29, %c1_30, %c128_31], %44 {strides = array<i32>} : memref<2x6x512xf32, #tpu.memory_space<vmem>>, vector<1x4x256xf32>,
    %c0_32 = arith.constant 0 : index
    %c0_33 = arith.constant 0 : index
    %c0_34 = arith.constant 0 : index
    %45 = vector.load %arg12[%c0_32, %c0_33, %c0_34] : memref<2x6x512xf32, #tpu.memory_space<vmem>>, vector<2x6x512xf32>
    %46 = arith.index_cast %arg0 : i32 to index
    %c0_35 = arith.constant 0 : index
    %47 = memref.load %arg5[%46, %c0_35] : memref<2x2xf32, #tpu.memory_space<smem>>
    %48 = vector.broadcast %47 : f32 to vector<4x256xf32>
    %49 = arith.index_cast %arg0 : i32 to index
    %c1_36 = arith.constant 1 : index
    %50 = memref.load %arg5[%49, %c1_36] : memref<2x2xf32, #tpu.memory_space<smem>>
    %51 = vector.broadcast %50 : f32 to vector<4x256xf32>
    %52 = vector.extract_strided_slice %45 {offsets = [0, 1, 128], sizes = [2, 4, 256], strides = [1, 1, 1]} : vector<2x6x512xf32> to vector<2x4x256xf32>
    %53 = arith.index_cast %arg0 : i32 to index
    %c0_37 = arith.constant 0 : index
    %54 = memref.load %arg4[%53, %c0_37] : memref<2x4xf32, #tpu.memory_space<smem>>
    %55 = vector.extract_strided_slice %52 {offsets = [0, 0, 0], sizes = [1, 4, 256], strides = [1, 1, 1]} : vector<2x4x256xf32> to vector<1x4x256xf32>
    %56 = vector.shape_cast %55 : vector<1x4x256xf32> to vector<4x256xf32>
    %57 = vector.broadcast %54 : f32 to vector<4x256xf32>
    %58 = arith.mulf %57, %56 : vector<4x256xf32>
    %59 = arith.addf %48, %58 : vector<4x256xf32>
    %60 = arith.index_cast %arg0 : i32 to index
    %c1_38 = arith.constant 1 : index
    %61 = memref.load %arg4[%60, %c1_38] : memref<2x4xf32, #tpu.memory_space<smem>>
    %62 = vector.extract_strided_slice %52 {offsets = [1, 0, 0], sizes = [1, 4, 256], strides = [1, 1, 1]} : vector<2x4x256xf32> to vector<1x4x256xf32>
    %63 = vector.shape_cast %62 : vector<1x4x256xf32> to vector<4x256xf32>
    %64 = vector.broadcast %61 : f32 to vector<4x256xf32>
    %65 = arith.mulf %64, %63 : vector<4x256xf32>
    %66 = arith.addf %59, %65 : vector<4x256xf32>
    %67 = arith.index_cast %arg0 : i32 to index
    %c2 = arith.constant 2 : index
    %68 = memref.load %arg4[%67, %c2] : memref<2x4xf32, #tpu.memory_space<smem>>
    %69 = vector.extract_strided_slice %52 {offsets = [0, 0, 0], sizes = [1, 4, 256], strides = [1, 1, 1]} : vector<2x4x256xf32> to vector<1x4x256xf32>
    %70 = vector.shape_cast %69 : vector<1x4x256xf32> to vector<4x256xf32>
    %71 = vector.broadcast %68 : f32 to vector<4x256xf32>
    %72 = arith.mulf %71, %70 : vector<4x256xf32>
    %73 = arith.addf %51, %72 : vector<4x256xf32>
    %74 = arith.index_cast %arg0 : i32 to index
    %c3 = arith.constant 3 : index
    %75 = memref.load %arg4[%74, %c3] : memref<2x4xf32, #tpu.memory_space<smem>>
    %76 = vector.extract_strided_slice %52 {offsets = [1, 0, 0], sizes = [1, 4, 256], strides = [1, 1, 1]} : vector<2x4x256xf32> to vector<1x4x256xf32>
    %77 = vector.shape_cast %76 : vector<1x4x256xf32> to vector<4x256xf32>
    %78 = vector.broadcast %75 : f32 to vector<4x256xf32>
    %79 = arith.mulf %78, %77 : vector<4x256xf32>
    %80 = arith.addf %73, %79 : vector<4x256xf32>
    %cst_39 = arith.constant 0.000000e+00 : f32
    %81 = vector.broadcast %cst_39 : f32 to vector<4x256xf32>
    %82 = arith.cmpf oge, %66, %81 : vector<4x256xf32>
    %cst_40 = arith.constant 0.00999999977 : f32
    %83 = vector.broadcast %cst_40 : f32 to vector<4x256xf32>
    %84 = arith.mulf %83, %66 : vector<4x256xf32>
    %85 = arith.select %82, %66, %84 : vector<4x256xi1>, vector<4x256xf32>
    %c0_41 = arith.constant 0 : index
    %c1_42 = arith.constant 1 : index
    %c128_43 = arith.constant 128 : index
    %86 = vector.load %arg12[%c0_41, %c1_42, %c128_43] : memref<2x6x512xf32, #tpu.memory_space<vmem>>, vector<1x4x256xf32>
    %87 = vector.shape_cast %86 : vector<1x4x256xf32> to vector<4x256xf32>
    %88 = vector.shape_cast %85 : vector<4x256xf32> to vector<1x4x256xf32>
    tpu.vector_store %arg12[%c0_41, %c1_42, %c128_43], %88 {strides = array<i32>} : memref<2x6x512xf32, #tpu.memory_space<vmem>>, vector<1x4x256xf32>,
    %cst_44 = arith.constant 0.000000e+00 : f32
    %89 = vector.broadcast %cst_44 : f32 to vector<4x256xf32>
    %90 = arith.cmpf oge, %80, %89 : vector<4x256xf32>
    %cst_45 = arith.constant 0.00999999977 : f32
    %91 = vector.broadcast %cst_45 : f32 to vector<4x256xf32>
    %92 = arith.mulf %91, %80 : vector<4x256xf32>
    %93 = arith.select %90, %80, %92 : vector<4x256xi1>, vector<4x256xf32>
    %c1_46 = arith.constant 1 : index
    %c1_47 = arith.constant 1 : index
    %c128_48 = arith.constant 128 : index
    %94 = vector.load %arg12[%c1_46, %c1_47, %c128_48] : memref<2x6x512xf32, #tpu.memory_space<vmem>>, vector<1x4x256xf32>
    %95 = vector.shape_cast %94 : vector<1x4x256xf32> to vector<4x256xf32>
    %96 = vector.shape_cast %93 : vector<4x256xf32> to vector<1x4x256xf32>
    tpu.vector_store %arg12[%c1_46, %c1_47, %c128_48], %96 {strides = array<i32>} : memref<2x6x512xf32, #tpu.memory_space<vmem>>, vector<1x4x256xf32>,
    %c0_49 = arith.constant 0 : index
    %c0_50 = arith.constant 0 : index
    %c0_51 = arith.constant 0 : index
    %97 = vector.load %arg12[%c0_49, %c0_50, %c0_51] : memref<2x6x512xf32, #tpu.memory_space<vmem>>, vector<2x6x512xf32>
    %98 = arith.index_cast %arg0 : i32 to index
    %c0_52 = arith.constant 0 : index
    %99 = memref.load %arg7[%98, %c0_52] : memref<2x2xf32, #tpu.memory_space<smem>>
    %100 = vector.broadcast %99 : f32 to vector<4x256xf32>
    %101 = arith.index_cast %arg0 : i32 to index
    %c1_53 = arith.constant 1 : index
    %102 = memref.load %arg7[%101, %c1_53] : memref<2x2xf32, #tpu.memory_space<smem>>
    %103 = vector.broadcast %102 : f32 to vector<4x256xf32>
    %104 = vector.extract_strided_slice %97 {offsets = [0, 1, 128], sizes = [2, 4, 256], strides = [1, 1, 1]} : vector<2x6x512xf32> to vector<2x4x256xf32>
    %105 = arith.index_cast %arg0 : i32 to index
    %c0_54 = arith.constant 0 : index
    %106 = memref.load %arg6[%105, %c0_54] : memref<2x4xf32, #tpu.memory_space<smem>>
    %107 = vector.extract_strided_slice %104 {offsets = [0, 0, 0], sizes = [1, 4, 256], strides = [1, 1, 1]} : vector<2x4x256xf32> to vector<1x4x256xf32>
    %108 = vector.shape_cast %107 : vector<1x4x256xf32> to vector<4x256xf32>
    %109 = vector.broadcast %106 : f32 to vector<4x256xf32>
    %110 = arith.mulf %109, %108 : vector<4x256xf32>
    %111 = arith.addf %100, %110 : vector<4x256xf32>
    %112 = arith.index_cast %arg0 : i32 to index
    %c1_55 = arith.constant 1 : index
    %113 = memref.load %arg6[%112, %c1_55] : memref<2x4xf32, #tpu.memory_space<smem>>
    %114 = vector.extract_strided_slice %104 {offsets = [1, 0, 0], sizes = [1, 4, 256], strides = [1, 1, 1]} : vector<2x4x256xf32> to vector<1x4x256xf32>
    %115 = vector.shape_cast %114 : vector<1x4x256xf32> to vector<4x256xf32>
    %116 = vector.broadcast %113 : f32 to vector<4x256xf32>
    %117 = arith.mulf %116, %115 : vector<4x256xf32>
    %118 = arith.addf %111, %117 : vector<4x256xf32>
    %119 = arith.index_cast %arg0 : i32 to index
    %c2_56 = arith.constant 2 : index
    %120 = memref.load %arg6[%119, %c2_56] : memref<2x4xf32, #tpu.memory_space<smem>>
    %121 = vector.extract_strided_slice %104 {offsets = [0, 0, 0], sizes = [1, 4, 256], strides = [1, 1, 1]} : vector<2x4x256xf32> to vector<1x4x256xf32>
    %122 = vector.shape_cast %121 : vector<1x4x256xf32> to vector<4x256xf32>
    %123 = vector.broadcast %120 : f32 to vector<4x256xf32>
    %124 = arith.mulf %123, %122 : vector<4x256xf32>
    %125 = arith.addf %103, %124 : vector<4x256xf32>
    %126 = arith.index_cast %arg0 : i32 to index
    %c3_57 = arith.constant 3 : index
    %127 = memref.load %arg6[%126, %c3_57] : memref<2x4xf32, #tpu.memory_space<smem>>
    %128 = vector.extract_strided_slice %104 {offsets = [1, 0, 0], sizes = [1, 4, 256], strides = [1, 1, 1]} : vector<2x4x256xf32> to vector<1x4x256xf32>
    %129 = vector.shape_cast %128 : vector<1x4x256xf32> to vector<4x256xf32>
    %130 = vector.broadcast %127 : f32 to vector<4x256xf32>
    %131 = arith.mulf %130, %129 : vector<4x256xf32>
    %132 = arith.addf %125, %131 : vector<4x256xf32>
    %cst_58 = arith.constant 0.000000e+00 : f32
    %133 = vector.broadcast %cst_58 : f32 to vector<4x256xf32>
    %134 = arith.cmpf oge, %118, %133 : vector<4x256xf32>
    %cst_59 = arith.constant 0.00999999977 : f32
    %135 = vector.broadcast %cst_59 : f32 to vector<4x256xf32>
    %136 = arith.mulf %135, %118 : vector<4x256xf32>
    %137 = arith.select %134, %118, %136 : vector<4x256xi1>, vector<4x256xf32>
    %c0_60 = arith.constant 0 : index
    %c1_61 = arith.constant 1 : index
    %c128_62 = arith.constant 128 : index
    %138 = vector.load %arg12[%c0_60, %c1_61, %c128_62] : memref<2x6x512xf32, #tpu.memory_space<vmem>>, vector<1x4x256xf32>
    %139 = vector.shape_cast %138 : vector<1x4x256xf32> to vector<4x256xf32>
    %140 = vector.shape_cast %137 : vector<4x256xf32> to vector<1x4x256xf32>
    tpu.vector_store %arg12[%c0_60, %c1_61, %c128_62], %140 {strides = array<i32>} : memref<2x6x512xf32, #tpu.memory_space<vmem>>, vector<1x4x256xf32>,
    %cst_63 = arith.constant 0.000000e+00 : f32
    %141 = vector.broadcast %cst_63 : f32 to vector<4x256xf32>
    %142 = arith.cmpf oge, %132, %141 : vector<4x256xf32>
    %cst_64 = arith.constant 0.00999999977 : f32
    %143 = vector.broadcast %cst_64 : f32 to vector<4x256xf32>
    %144 = arith.mulf %143, %132 : vector<4x256xf32>
    %145 = arith.select %142, %132, %144 : vector<4x256xi1>, vector<4x256xf32>
    %c1_65 = arith.constant 1 : index
    %c1_66 = arith.constant 1 : index
    %c128_67 = arith.constant 128 : index
    %146 = vector.load %arg12[%c1_65, %c1_66, %c128_67] : memref<2x6x512xf32, #tpu.memory_space<vmem>>, vector<1x4x256xf32>
    %147 = vector.shape_cast %146 : vector<1x4x256xf32> to vector<4x256xf32>
    %148 = vector.shape_cast %145 : vector<4x256xf32> to vector<1x4x256xf32>
    tpu.vector_store %arg12[%c1_65, %c1_66, %c128_67], %148 {strides = array<i32>} : memref<2x6x512xf32, #tpu.memory_space<vmem>>, vector<1x4x256xf32>,
    %c0_68 = arith.constant 0 : index
    %c0_69 = arith.constant 0 : index
    %c0_70 = arith.constant 0 : index
    %149 = vector.load %arg12[%c0_68, %c0_69, %c0_70] : memref<2x6x512xf32, #tpu.memory_space<vmem>>, vector<2x6x512xf32>
    %150 = arith.index_cast %arg0 : i32 to index
    %c0_71 = arith.constant 0 : index
    %151 = memref.load %arg9[%150, %c0_71] : memref<2x1xf32, #tpu.memory_space<smem>>
    %152 = vector.broadcast %151 : f32 to vector<4x256xf32>
    %c1_i32 = arith.constant 1 : i32
    %153 = tpu.dynamic_rotate %149 by %c1_i32 dim 2 : vector<2x6x512xf32>, i32 -> vector<2x6x512xf32>
    %154 = tpu.iota {dimensions = array<i32: 2>} : vector<1x1x512xi32>
    %c128_i32 = arith.constant 128 : i32
    %155 = vector.broadcast %c128_i32 : i32 to vector<1x1x512xi32>
    %156 = arith.cmpi sge, %154, %155 : vector<1x1x512xi32>
    %c384_i32 = arith.constant 384 : i32
    %157 = vector.broadcast %c384_i32 : i32 to vector<1x1x512xi32>
    %158 = arith.cmpi slt, %154, %157 : vector<1x1x512xi32>
    %159 = arith.andi %156, %158 : vector<1x1x512xi1>
    %c128_i32_72 = arith.constant 128 : i32
    %160 = vector.broadcast %c128_i32_72 : i32 to vector<1x1x512xi32>
    %161 = arith.subi %154, %160 : vector<1x1x512xi32>
    %c16_i32 = arith.constant 16 : i32
    %c0_i32 = arith.constant 0 : i32
    %162 = arith.cmpi eq, %c16_i32, %c0_i32 : i32
    %c1_i32_73 = arith.constant 1 : i32
    %163 = arith.select %162, %c1_i32_73, %c16_i32 : i32
    %164 = vector.broadcast %163 : i32 to vector<1x1x512xi32>
    %165 = arith.remsi %161, %164 : vector<1x1x512xi32>
    %c0_i32_74 = arith.constant 0 : i32
    %166 = vector.broadcast %c0_i32_74 : i32 to vector<1x1x512xi32>
    %167 = arith.cmpi ne, %165, %166 : vector<1x1x512xi32>
    %c0_i32_75 = arith.constant 0 : i32
    %168 = vector.broadcast %c0_i32_75 : i32 to vector<1x1x512xi32>
    %169 = arith.cmpi slt, %165, %168 : vector<1x1x512xi32>
    %c0_i32_76 = arith.constant 0 : i32
    %170 = arith.cmpi slt, %163, %c0_i32_76 : i32
    %171 = vector.broadcast %170 : i1 to vector<1x1x512xi1>
    %172 = vector.broadcast %171 : vector<1x1x512xi1> to vector<1x1x512xi1>
    %173 = arith.xori %169, %172 : vector<1x1x512xi1>
    %174 = arith.andi %173, %167 : vector<1x1x512xi1>
    %175 = vector.broadcast %163 : i32 to vector<1x1x512xi32>
    %176 = arith.addi %165, %175 : vector<1x1x512xi32>
    %177 = arith.select %174, %176, %165 : vector<1x1x512xi1>, vector<1x1x512xi32>
    %c-1_i32 = arith.constant -1 : i32
    %178 = vector.broadcast %c-1_i32 : i32 to vector<1x1x512xi32>
    %179 = arith.addi %177, %178 : vector<1x1x512xi32>
    %c0_i32_77 = arith.constant 0 : i32
    %180 = vector.broadcast %c0_i32_77 : i32 to vector<1x1x512xi32>
    %181 = arith.cmpi sge, %179, %180 : vector<1x1x512xi32>
    %182 = arith.andi %159, %181 : vector<1x1x512xi1>
    %c-1_i32_78 = arith.constant -1 : i32
    %183 = vector.broadcast %c-1_i32_78 : i32 to vector<1x1x512xi32>
    %184 = arith.addi %177, %183 : vector<1x1x512xi32>
    %c16_i32_79 = arith.constant 16 : i32
    %185 = vector.broadcast %c16_i32_79 : i32 to vector<1x1x512xi32>
    %186 = arith.cmpi slt, %184, %185 : vector<1x1x512xi32>
    %187 = arith.andi %182, %186 : vector<1x1x512xi1>
    %cst_80 = arith.constant 0.000000e+00 : f32
    %188 = vector.shape_cast %187 : vector<1x1x512xi1> to vector<1x1x512xi1>
    %189 = vector.broadcast %188 : vector<1x1x512xi1> to vector<2x6x512xi1>
    %190 = vector.broadcast %cst_80 : f32 to vector<2x6x512xf32>
    %191 = arith.select %189, %153, %190 : vector<2x6x512xi1>, vector<2x6x512xf32>
    %c16_i32_81 = arith.constant 16 : i32
    %192 = tpu.dynamic_rotate %191 by %c16_i32_81 dim 2 : vector<2x6x512xf32>, i32 -> vector<2x6x512xf32>
    %193 = vector.extract_strided_slice %192 {offsets = [0, 0, 128], sizes = [2, 4, 256], strides = [1, 1, 1]} : vector<2x6x512xf32> to vector<2x4x256xf32>
    %194 = arith.index_cast %arg0 : i32 to index
    %c0_82 = arith.constant 0 : index
    %195 = memref.load %arg8[%194, %c0_82] : memref<2x54xf32, #tpu.memory_space<smem>>
    %196 = vector.extract_strided_slice %193 {offsets = [0, 0, 0], sizes = [1, 4, 256], strides = [1, 1, 1]} : vector<2x4x256xf32> to vector<1x4x256xf32>
    %197 = vector.shape_cast %196 : vector<1x4x256xf32> to vector<4x256xf32>
    %198 = vector.broadcast %195 : f32 to vector<4x256xf32>
    %199 = arith.mulf %198, %197 : vector<4x256xf32>
    %200 = arith.addf %152, %199 : vector<4x256xf32>
    %201 = arith.index_cast %arg0 : i32 to index
    %c27 = arith.constant 27 : index
    %202 = memref.load %arg8[%201, %c27] : memref<2x54xf32, #tpu.memory_space<smem>>
    %203 = vector.extract_strided_slice %193 {offsets = [1, 0, 0], sizes = [1, 4, 256], strides = [1, 1, 1]} : vector<2x4x256xf32> to vector<1x4x256xf32>
    %204 = vector.shape_cast %203 : vector<1x4x256xf32> to vector<4x256xf32>
    %205 = vector.broadcast %202 : f32 to vector<4x256xf32>
    %206 = arith.mulf %205, %204 : vector<4x256xf32>
    %207 = arith.addf %200, %206 : vector<4x256xf32>
    %208 = vector.extract_strided_slice %192 {offsets = [0, 1, 128], sizes = [2, 4, 256], strides = [1, 1, 1]} : vector<2x6x512xf32> to vector<2x4x256xf32>
    %209 = arith.index_cast %arg0 : i32 to index
    %c9 = arith.constant 9 : index
    %210 = memref.load %arg8[%209, %c9] : memref<2x54xf32, #tpu.memory_space<smem>>
    %211 = vector.extract_strided_slice %208 {offsets = [0, 0, 0], sizes = [1, 4, 256], strides = [1, 1, 1]} : vector<2x4x256xf32> to vector<1x4x256xf32>
    %212 = vector.shape_cast %211 : vector<1x4x256xf32> to vector<4x256xf32>
    %213 = vector.broadcast %210 : f32 to vector<4x256xf32>
    %214 = arith.mulf %213, %212 : vector<4x256xf32>
    %215 = arith.addf %207, %214 : vector<4x256xf32>
    %216 = arith.index_cast %arg0 : i32 to index
    %c36 = arith.constant 36 : index
    %217 = memref.load %arg8[%216, %c36] : memref<2x54xf32, #tpu.memory_space<smem>>
    %218 = vector.extract_strided_slice %208 {offsets = [1, 0, 0], sizes = [1, 4, 256], strides = [1, 1, 1]} : vector<2x4x256xf32> to vector<1x4x256xf32>
    %219 = vector.shape_cast %218 : vector<1x4x256xf32> to vector<4x256xf32>
    %220 = vector.broadcast %217 : f32 to vector<4x256xf32>
    %221 = arith.mulf %220, %219 : vector<4x256xf32>
    %222 = arith.addf %215, %221 : vector<4x256xf32>
    %223 = vector.extract_strided_slice %192 {offsets = [0, 2, 128], sizes = [2, 4, 256], strides = [1, 1, 1]} : vector<2x6x512xf32> to vector<2x4x256xf32>
    %224 = arith.index_cast %arg0 : i32 to index
    %c18 = arith.constant 18 : index
    %225 = memref.load %arg8[%224, %c18] : memref<2x54xf32, #tpu.memory_space<smem>>
    %226 = vector.extract_strided_slice %223 {offsets = [0, 0, 0], sizes = [1, 4, 256], strides = [1, 1, 1]} : vector<2x4x256xf32> to vector<1x4x256xf32>
    %227 = vector.shape_cast %226 : vector<1x4x256xf32> to vector<4x256xf32>
    %228 = vector.broadcast %225 : f32 to vector<4x256xf32>
    %229 = arith.mulf %228, %227 : vector<4x256xf32>
    %230 = arith.addf %222, %229 : vector<4x256xf32>
    %231 = arith.index_cast %arg0 : i32 to index
    %c45 = arith.constant 45 : index
    %232 = memref.load %arg8[%231, %c45] : memref<2x54xf32, #tpu.memory_space<smem>>
    %233 = vector.extract_strided_slice %223 {offsets = [1, 0, 0], sizes = [1, 4, 256], strides = [1, 1, 1]} : vector<2x4x256xf32> to vector<1x4x256xf32>
    %234 = vector.shape_cast %233 : vector<1x4x256xf32> to vector<4x256xf32>
    %235 = vector.broadcast %232 : f32 to vector<4x256xf32>
    %236 = arith.mulf %235, %234 : vector<4x256xf32>
    %237 = arith.addf %230, %236 : vector<4x256xf32>
    %238 = vector.extract_strided_slice %191 {offsets = [0, 0, 128], sizes = [2, 4, 256], strides = [1, 1, 1]} : vector<2x6x512xf32> to vector<2x4x256xf32>
    %239 = arith.index_cast %arg0 : i32 to index
    %c3_83 = arith.constant 3 : index
    %240 = memref.load %arg8[%239, %c3_83] : memref<2x54xf32, #tpu.memory_space<smem>>
    %241 = vector.extract_strided_slice %238 {offsets = [0, 0, 0], sizes = [1, 4, 256], strides = [1, 1, 1]} : vector<2x4x256xf32> to vector<1x4x256xf32>
    %242 = vector.shape_cast %241 : vector<1x4x256xf32> to vector<4x256xf32>
    %243 = vector.broadcast %240 : f32 to vector<4x256xf32>
    %244 = arith.mulf %243, %242 : vector<4x256xf32>
    %245 = arith.addf %237, %244 : vector<4x256xf32>
    %246 = arith.index_cast %arg0 : i32 to index
    %c30 = arith.constant 30 : index
    %247 = memref.load %arg8[%246, %c30] : memref<2x54xf32, #tpu.memory_space<smem>>
    %248 = vector.extract_strided_slice %238 {offsets = [1, 0, 0], sizes = [1, 4, 256], strides = [1, 1, 1]} : vector<2x4x256xf32> to vector<1x4x256xf32>
    %249 = vector.shape_cast %248 : vector<1x4x256xf32> to vector<4x256xf32>
    %250 = vector.broadcast %247 : f32 to vector<4x256xf32>
    %251 = arith.mulf %250, %249 : vector<4x256xf32>
    %252 = arith.addf %245, %251 : vector<4x256xf32>
    %253 = vector.extract_strided_slice %191 {offsets = [0, 1, 128], sizes = [2, 4, 256], strides = [1, 1, 1]} : vector<2x6x512xf32> to vector<2x4x256xf32>
    %254 = arith.index_cast %arg0 : i32 to index
    %c12 = arith.constant 12 : index
    %255 = memref.load %arg8[%254, %c12] : memref<2x54xf32, #tpu.memory_space<smem>>
    %256 = vector.extract_strided_slice %253 {offsets = [0, 0, 0], sizes = [1, 4, 256], strides = [1, 1, 1]} : vector<2x4x256xf32> to vector<1x4x256xf32>
    %257 = vector.shape_cast %256 : vector<1x4x256xf32> to vector<4x256xf32>
    %258 = vector.broadcast %255 : f32 to vector<4x256xf32>
    %259 = arith.mulf %258, %257 : vector<4x256xf32>
    %260 = arith.addf %252, %259 : vector<4x256xf32>
    %261 = arith.index_cast %arg0 : i32 to index
    %c39 = arith.constant 39 : index
    %262 = memref.load %arg8[%261, %c39] : memref<2x54xf32, #tpu.memory_space<smem>>
    %263 = vector.extract_strided_slice %253 {offsets = [1, 0, 0], sizes = [1, 4, 256], strides = [1, 1, 1]} : vector<2x4x256xf32> to vector<1x4x256xf32>
    %264 = vector.shape_cast %263 : vector<1x4x256xf32> to vector<4x256xf32>
    %265 = vector.broadcast %262 : f32 to vector<4x256xf32>
    %266 = arith.mulf %265, %264 : vector<4x256xf32>
    %267 = arith.addf %260, %266 : vector<4x256xf32>
    %268 = vector.extract_strided_slice %191 {offsets = [0, 2, 128], sizes = [2, 4, 256], strides = [1, 1, 1]} : vector<2x6x512xf32> to vector<2x4x256xf32>
    %269 = arith.index_cast %arg0 : i32 to index
    %c21 = arith.constant 21 : index
    %270 = memref.load %arg8[%269, %c21] : memref<2x54xf32, #tpu.memory_space<smem>>
    %271 = vector.extract_strided_slice %268 {offsets = [0, 0, 0], sizes = [1, 4, 256], strides = [1, 1, 1]} : vector<2x4x256xf32> to vector<1x4x256xf32>
    %272 = vector.shape_cast %271 : vector<1x4x256xf32> to vector<4x256xf32>
    %273 = vector.broadcast %270 : f32 to vector<4x256xf32>
    %274 = arith.mulf %273, %272 : vector<4x256xf32>
    %275 = arith.addf %267, %274 : vector<4x256xf32>
    %276 = arith.index_cast %arg0 : i32 to index
    %c48 = arith.constant 48 : index
    %277 = memref.load %arg8[%276, %c48] : memref<2x54xf32, #tpu.memory_space<smem>>
    %278 = vector.extract_strided_slice %268 {offsets = [1, 0, 0], sizes = [1, 4, 256], strides = [1, 1, 1]} : vector<2x4x256xf32> to vector<1x4x256xf32>
    %279 = vector.shape_cast %278 : vector<1x4x256xf32> to vector<4x256xf32>
    %280 = vector.broadcast %277 : f32 to vector<4x256xf32>
    %281 = arith.mulf %280, %279 : vector<4x256xf32>
    %282 = arith.addf %275, %281 : vector<4x256xf32>
    %c496_i32 = arith.constant 496 : i32
    %283 = tpu.dynamic_rotate %191 by %c496_i32 dim 2 : vector<2x6x512xf32>, i32 -> vector<2x6x512xf32>
    %284 = vector.extract_strided_slice %283 {offsets = [0, 0, 128], sizes = [2, 4, 256], strides = [1, 1, 1]} : vector<2x6x512xf32> to vector<2x4x256xf32>
    %285 = arith.index_cast %arg0 : i32 to index
    %c6 = arith.constant 6 : index
    %286 = memref.load %arg8[%285, %c6] : memref<2x54xf32, #tpu.memory_space<smem>>
    %287 = vector.extract_strided_slice %284 {offsets = [0, 0, 0], sizes = [1, 4, 256], strides = [1, 1, 1]} : vector<2x4x256xf32> to vector<1x4x256xf32>
    %288 = vector.shape_cast %287 : vector<1x4x256xf32> to vector<4x256xf32>
    %289 = vector.broadcast %286 : f32 to vector<4x256xf32>
    %290 = arith.mulf %289, %288 : vector<4x256xf32>
    %291 = arith.addf %282, %290 : vector<4x256xf32>
    %292 = arith.index_cast %arg0 : i32 to index
    %c33 = arith.constant 33 : index
    %293 = memref.load %arg8[%292, %c33] : memref<2x54xf32, #tpu.memory_space<smem>>
    %294 = vector.extract_strided_slice %284 {offsets = [1, 0, 0], sizes = [1, 4, 256], strides = [1, 1, 1]} : vector<2x4x256xf32> to vector<1x4x256xf32>
    %295 = vector.shape_cast %294 : vector<1x4x256xf32> to vector<4x256xf32>
    %296 = vector.broadcast %293 : f32 to vector<4x256xf32>
    %297 = arith.mulf %296, %295 : vector<4x256xf32>
    %298 = arith.addf %291, %297 : vector<4x256xf32>
    %299 = vector.extract_strided_slice %283 {offsets = [0, 1, 128], sizes = [2, 4, 256], strides = [1, 1, 1]} : vector<2x6x512xf32> to vector<2x4x256xf32>
    %300 = arith.index_cast %arg0 : i32 to index
    %c15 = arith.constant 15 : index
    %301 = memref.load %arg8[%300, %c15] : memref<2x54xf32, #tpu.memory_space<smem>>
    %302 = vector.extract_strided_slice %299 {offsets = [0, 0, 0], sizes = [1, 4, 256], strides = [1, 1, 1]} : vector<2x4x256xf32> to vector<1x4x256xf32>
    %303 = vector.shape_cast %302 : vector<1x4x256xf32> to vector<4x256xf32>
    %304 = vector.broadcast %301 : f32 to vector<4x256xf32>
    %305 = arith.mulf %304, %303 : vector<4x256xf32>
    %306 = arith.addf %298, %305 : vector<4x256xf32>
    %307 = arith.index_cast %arg0 : i32 to index
    %c42 = arith.constant 42 : index
    %308 = memref.load %arg8[%307, %c42] : memref<2x54xf32, #tpu.memory_space<smem>>
    %309 = vector.extract_strided_slice %299 {offsets = [1, 0, 0], sizes = [1, 4, 256], strides = [1, 1, 1]} : vector<2x4x256xf32> to vector<1x4x256xf32>
    %310 = vector.shape_cast %309 : vector<1x4x256xf32> to vector<4x256xf32>
    %311 = vector.broadcast %308 : f32 to vector<4x256xf32>
    %312 = arith.mulf %311, %310 : vector<4x256xf32>
    %313 = arith.addf %306, %312 : vector<4x256xf32>
    %314 = vector.extract_strided_slice %283 {offsets = [0, 2, 128], sizes = [2, 4, 256], strides = [1, 1, 1]} : vector<2x6x512xf32> to vector<2x4x256xf32>
    %315 = arith.index_cast %arg0 : i32 to index
    %c24 = arith.constant 24 : index
    %316 = memref.load %arg8[%315, %c24] : memref<2x54xf32, #tpu.memory_space<smem>>
    %317 = vector.extract_strided_slice %314 {offsets = [0, 0, 0], sizes = [1, 4, 256], strides = [1, 1, 1]} : vector<2x4x256xf32> to vector<1x4x256xf32>
    %318 = vector.shape_cast %317 : vector<1x4x256xf32> to vector<4x256xf32>
    %319 = vector.broadcast %316 : f32 to vector<4x256xf32>
    %320 = arith.mulf %319, %318 : vector<4x256xf32>
    %321 = arith.addf %313, %320 : vector<4x256xf32>
    %322 = arith.index_cast %arg0 : i32 to index
    %c51 = arith.constant 51 : index
    %323 = memref.load %arg8[%322, %c51] : memref<2x54xf32, #tpu.memory_space<smem>>
    %324 = vector.extract_strided_slice %314 {offsets = [1, 0, 0], sizes = [1, 4, 256], strides = [1, 1, 1]} : vector<2x4x256xf32> to vector<1x4x256xf32>
    %325 = vector.shape_cast %324 : vector<1x4x256xf32> to vector<4x256xf32>
    %326 = vector.broadcast %323 : f32 to vector<4x256xf32>
    %327 = arith.mulf %326, %325 : vector<4x256xf32>
    %328 = arith.addf %321, %327 : vector<4x256xf32>
    %c16_i32_84 = arith.constant 16 : i32
    %329 = tpu.dynamic_rotate %149 by %c16_i32_84 dim 2 : vector<2x6x512xf32>, i32 -> vector<2x6x512xf32>
    %330 = vector.extract_strided_slice %329 {offsets = [0, 0, 128], sizes = [2, 4, 256], strides = [1, 1, 1]} : vector<2x6x512xf32> to vector<2x4x256xf32>
    %331 = arith.index_cast %arg0 : i32 to index
    %c1_85 = arith.constant 1 : index
    %332 = memref.load %arg8[%331, %c1_85] : memref<2x54xf32, #tpu.memory_space<smem>>
    %333 = vector.extract_strided_slice %330 {offsets = [0, 0, 0], sizes = [1, 4, 256], strides = [1, 1, 1]} : vector<2x4x256xf32> to vector<1x4x256xf32>
    %334 = vector.shape_cast %333 : vector<1x4x256xf32> to vector<4x256xf32>
    %335 = vector.broadcast %332 : f32 to vector<4x256xf32>
    %336 = arith.mulf %335, %334 : vector<4x256xf32>
    %337 = arith.addf %328, %336 : vector<4x256xf32>
    %338 = arith.index_cast %arg0 : i32 to index
    %c28 = arith.constant 28 : index
    %339 = memref.load %arg8[%338, %c28] : memref<2x54xf32, #tpu.memory_space<smem>>
    %340 = vector.extract_strided_slice %330 {offsets = [1, 0, 0], sizes = [1, 4, 256], strides = [1, 1, 1]} : vector<2x4x256xf32> to vector<1x4x256xf32>
    %341 = vector.shape_cast %340 : vector<1x4x256xf32> to vector<4x256xf32>
    %342 = vector.broadcast %339 : f32 to vector<4x256xf32>
    %343 = arith.mulf %342, %341 : vector<4x256xf32>
    %344 = arith.addf %337, %343 : vector<4x256xf32>
    %345 = vector.extract_strided_slice %329 {offsets = [0, 1, 128], sizes = [2, 4, 256], strides = [1, 1, 1]} : vector<2x6x512xf32> to vector<2x4x256xf32>
    %346 = arith.index_cast %arg0 : i32 to index
    %c10 = arith.constant 10 : index
    %347 = memref.load %arg8[%346, %c10] : memref<2x54xf32, #tpu.memory_space<smem>>
    %348 = vector.extract_strided_slice %345 {offsets = [0, 0, 0], sizes = [1, 4, 256], strides = [1, 1, 1]} : vector<2x4x256xf32> to vector<1x4x256xf32>
    %349 = vector.shape_cast %348 : vector<1x4x256xf32> to vector<4x256xf32>
    %350 = vector.broadcast %347 : f32 to vector<4x256xf32>
    %351 = arith.mulf %350, %349 : vector<4x256xf32>
    %352 = arith.addf %344, %351 : vector<4x256xf32>
    %353 = arith.index_cast %arg0 : i32 to index
    %c37 = arith.constant 37 : index
    %354 = memref.load %arg8[%353, %c37] : memref<2x54xf32, #tpu.memory_space<smem>>
    %355 = vector.extract_strided_slice %345 {offsets = [1, 0, 0], sizes = [1, 4, 256], strides = [1, 1, 1]} : vector<2x4x256xf32> to vector<1x4x256xf32>
    %356 = vector.shape_cast %355 : vector<1x4x256xf32> to vector<4x256xf32>
    %357 = vector.broadcast %354 : f32 to vector<4x256xf32>
    %358 = arith.mulf %357, %356 : vector<4x256xf32>
    %359 = arith.addf %352, %358 : vector<4x256xf32>
    %360 = vector.extract_strided_slice %329 {offsets = [0, 2, 128], sizes = [2, 4, 256], strides = [1, 1, 1]} : vector<2x6x512xf32> to vector<2x4x256xf32>
    %361 = arith.index_cast %arg0 : i32 to index
    %c19 = arith.constant 19 : index
    %362 = memref.load %arg8[%361, %c19] : memref<2x54xf32, #tpu.memory_space<smem>>
    %363 = vector.extract_strided_slice %360 {offsets = [0, 0, 0], sizes = [1, 4, 256], strides = [1, 1, 1]} : vector<2x4x256xf32> to vector<1x4x256xf32>
    %364 = vector.shape_cast %363 : vector<1x4x256xf32> to vector<4x256xf32>
    %365 = vector.broadcast %362 : f32 to vector<4x256xf32>
    %366 = arith.mulf %365, %364 : vector<4x256xf32>
    %367 = arith.addf %359, %366 : vector<4x256xf32>
    %368 = arith.index_cast %arg0 : i32 to index
    %c46 = arith.constant 46 : index
    %369 = memref.load %arg8[%368, %c46] : memref<2x54xf32, #tpu.memory_space<smem>>
    %370 = vector.extract_strided_slice %360 {offsets = [1, 0, 0], sizes = [1, 4, 256], strides = [1, 1, 1]} : vector<2x4x256xf32> to vector<1x4x256xf32>
    %371 = vector.shape_cast %370 : vector<1x4x256xf32> to vector<4x256xf32>
    %372 = vector.broadcast %369 : f32 to vector<4x256xf32>
    %373 = arith.mulf %372, %371 : vector<4x256xf32>
    %374 = arith.addf %367, %373 : vector<4x256xf32>
    %375 = vector.extract_strided_slice %149 {offsets = [0, 0, 128], sizes = [2, 4, 256], strides = [1, 1, 1]} : vector<2x6x512xf32> to vector<2x4x256xf32>
    %376 = arith.index_cast %arg0 : i32 to index
    %c4 = arith.constant 4 : index
    %377 = memref.load %arg8[%376, %c4] : memref<2x54xf32, #tpu.memory_space<smem>>
    %378 = vector.extract_strided_slice %375 {offsets = [0, 0, 0], sizes = [1, 4, 256], strides = [1, 1, 1]} : vector<2x4x256xf32> to vector<1x4x256xf32>
    %379 = vector.shape_cast %378 : vector<1x4x256xf32> to vector<4x256xf32>
    %380 = vector.broadcast %377 : f32 to vector<4x256xf32>
    %381 = arith.mulf %380, %379 : vector<4x256xf32>
    %382 = arith.addf %374, %381 : vector<4x256xf32>
    %383 = arith.index_cast %arg0 : i32 to index
    %c31 = arith.constant 31 : index
    %384 = memref.load %arg8[%383, %c31] : memref<2x54xf32, #tpu.memory_space<smem>>
    %385 = vector.extract_strided_slice %375 {offsets = [1, 0, 0], sizes = [1, 4, 256], strides = [1, 1, 1]} : vector<2x4x256xf32> to vector<1x4x256xf32>
    %386 = vector.shape_cast %385 : vector<1x4x256xf32> to vector<4x256xf32>
    %387 = vector.broadcast %384 : f32 to vector<4x256xf32>
    %388 = arith.mulf %387, %386 : vector<4x256xf32>
    %389 = arith.addf %382, %388 : vector<4x256xf32>
    %390 = vector.extract_strided_slice %149 {offsets = [0, 1, 128], sizes = [2, 4, 256], strides = [1, 1, 1]} : vector<2x6x512xf32> to vector<2x4x256xf32>
    %391 = arith.index_cast %arg0 : i32 to index
    %c13 = arith.constant 13 : index
    %392 = memref.load %arg8[%391, %c13] : memref<2x54xf32, #tpu.memory_space<smem>>
    %393 = vector.extract_strided_slice %390 {offsets = [0, 0, 0], sizes = [1, 4, 256], strides = [1, 1, 1]} : vector<2x4x256xf32> to vector<1x4x256xf32>
    %394 = vector.shape_cast %393 : vector<1x4x256xf32> to vector<4x256xf32>
    %395 = vector.broadcast %392 : f32 to vector<4x256xf32>
    %396 = arith.mulf %395, %394 : vector<4x256xf32>
    %397 = arith.addf %389, %396 : vector<4x256xf32>
    %398 = arith.index_cast %arg0 : i32 to index
    %c40 = arith.constant 40 : index
    %399 = memref.load %arg8[%398, %c40] : memref<2x54xf32, #tpu.memory_space<smem>>
    %400 = vector.extract_strided_slice %390 {offsets = [1, 0, 0], sizes = [1, 4, 256], strides = [1, 1, 1]} : vector<2x4x256xf32> to vector<1x4x256xf32>
    %401 = vector.shape_cast %400 : vector<1x4x256xf32> to vector<4x256xf32>
    %402 = vector.broadcast %399 : f32 to vector<4x256xf32>
    %403 = arith.mulf %402, %401 : vector<4x256xf32>
    %404 = arith.addf %397, %403 : vector<4x256xf32>
    %405 = vector.extract_strided_slice %149 {offsets = [0, 2, 128], sizes = [2, 4, 256], strides = [1, 1, 1]} : vector<2x6x512xf32> to vector<2x4x256xf32>
    %406 = arith.index_cast %arg0 : i32 to index
    %c22 = arith.constant 22 : index
    %407 = memref.load %arg8[%406, %c22] : memref<2x54xf32, #tpu.memory_space<smem>>
    %408 = vector.extract_strided_slice %405 {offsets = [0, 0, 0], sizes = [1, 4, 256], strides = [1, 1, 1]} : vector<2x4x256xf32> to vector<1x4x256xf32>
    %409 = vector.shape_cast %408 : vector<1x4x256xf32> to vector<4x256xf32>
    %410 = vector.broadcast %407 : f32 to vector<4x256xf32>
    %411 = arith.mulf %410, %409 : vector<4x256xf32>
    %412 = arith.addf %404, %411 : vector<4x256xf32>
    %413 = arith.index_cast %arg0 : i32 to index
    %c49 = arith.constant 49 : index
    %414 = memref.load %arg8[%413, %c49] : memref<2x54xf32, #tpu.memory_space<smem>>
    %415 = vector.extract_strided_slice %405 {offsets = [1, 0, 0], sizes = [1, 4, 256], strides = [1, 1, 1]} : vector<2x4x256xf32> to vector<1x4x256xf32>
    %416 = vector.shape_cast %415 : vector<1x4x256xf32> to vector<4x256xf32>
    %417 = vector.broadcast %414 : f32 to vector<4x256xf32>
    %418 = arith.mulf %417, %416 : vector<4x256xf32>
    %419 = arith.addf %412, %418 : vector<4x256xf32>
    %c496_i32_86 = arith.constant 496 : i32
    %420 = tpu.dynamic_rotate %149 by %c496_i32_86 dim 2 : vector<2x6x512xf32>, i32 -> vector<2x6x512xf32>
    %421 = vector.extract_strided_slice %420 {offsets = [0, 0, 128], sizes = [2, 4, 256], strides = [1, 1, 1]} : vector<2x6x512xf32> to vector<2x4x256xf32>
    %422 = arith.index_cast %arg0 : i32 to index
    %c7 = arith.constant 7 : index
    %423 = memref.load %arg8[%422, %c7] : memref<2x54xf32, #tpu.memory_space<smem>>
    %424 = vector.extract_strided_slice %421 {offsets = [0, 0, 0], sizes = [1, 4, 256], strides = [1, 1, 1]} : vector<2x4x256xf32> to vector<1x4x256xf32>
    %425 = vector.shape_cast %424 : vector<1x4x256xf32> to vector<4x256xf32>
    %426 = vector.broadcast %423 : f32 to vector<4x256xf32>
    %427 = arith.mulf %426, %425 : vector<4x256xf32>
    %428 = arith.addf %419, %427 : vector<4x256xf32>
    %429 = arith.index_cast %arg0 : i32 to index
    %c34 = arith.constant 34 : index
    %430 = memref.load %arg8[%429, %c34] : memref<2x54xf32, #tpu.memory_space<smem>>
    %431 = vector.extract_strided_slice %421 {offsets = [1, 0, 0], sizes = [1, 4, 256], strides = [1, 1, 1]} : vector<2x4x256xf32> to vector<1x4x256xf32>
    %432 = vector.shape_cast %431 : vector<1x4x256xf32> to vector<4x256xf32>
    %433 = vector.broadcast %430 : f32 to vector<4x256xf32>
    %434 = arith.mulf %433, %432 : vector<4x256xf32>
    %435 = arith.addf %428, %434 : vector<4x256xf32>
    %436 = vector.extract_strided_slice %420 {offsets = [0, 1, 128], sizes = [2, 4, 256], strides = [1, 1, 1]} : vector<2x6x512xf32> to vector<2x4x256xf32>
    %437 = arith.index_cast %arg0 : i32 to index
    %c16 = arith.constant 16 : index
    %438 = memref.load %arg8[%437, %c16] : memref<2x54xf32, #tpu.memory_space<smem>>
    %439 = vector.extract_strided_slice %436 {offsets = [0, 0, 0], sizes = [1, 4, 256], strides = [1, 1, 1]} : vector<2x4x256xf32> to vector<1x4x256xf32>
    %440 = vector.shape_cast %439 : vector<1x4x256xf32> to vector<4x256xf32>
    %441 = vector.broadcast %438 : f32 to vector<4x256xf32>
    %442 = arith.mulf %441, %440 : vector<4x256xf32>
    %443 = arith.addf %435, %442 : vector<4x256xf32>
    %444 = arith.index_cast %arg0 : i32 to index
    %c43 = arith.constant 43 : index
    %445 = memref.load %arg8[%444, %c43] : memref<2x54xf32, #tpu.memory_space<smem>>
    %446 = vector.extract_strided_slice %436 {offsets = [1, 0, 0], sizes = [1, 4, 256], strides = [1, 1, 1]} : vector<2x4x256xf32> to vector<1x4x256xf32>
    %447 = vector.shape_cast %446 : vector<1x4x256xf32> to vector<4x256xf32>
    %448 = vector.broadcast %445 : f32 to vector<4x256xf32>
    %449 = arith.mulf %448, %447 : vector<4x256xf32>
    %450 = arith.addf %443, %449 : vector<4x256xf32>
    %451 = vector.extract_strided_slice %420 {offsets = [0, 2, 128], sizes = [2, 4, 256], strides = [1, 1, 1]} : vector<2x6x512xf32> to vector<2x4x256xf32>
    %452 = arith.index_cast %arg0 : i32 to index
    %c25 = arith.constant 25 : index
    %453 = memref.load %arg8[%452, %c25] : memref<2x54xf32, #tpu.memory_space<smem>>
    %454 = vector.extract_strided_slice %451 {offsets = [0, 0, 0], sizes = [1, 4, 256], strides = [1, 1, 1]} : vector<2x4x256xf32> to vector<1x4x256xf32>
    %455 = vector.shape_cast %454 : vector<1x4x256xf32> to vector<4x256xf32>
    %456 = vector.broadcast %453 : f32 to vector<4x256xf32>
    %457 = arith.mulf %456, %455 : vector<4x256xf32>
    %458 = arith.addf %450, %457 : vector<4x256xf32>
    %459 = arith.index_cast %arg0 : i32 to index
    %c52 = arith.constant 52 : index
    %460 = memref.load %arg8[%459, %c52] : memref<2x54xf32, #tpu.memory_space<smem>>
    %461 = vector.extract_strided_slice %451 {offsets = [1, 0, 0], sizes = [1, 4, 256], strides = [1, 1, 1]} : vector<2x4x256xf32> to vector<1x4x256xf32>
    %462 = vector.shape_cast %461 : vector<1x4x256xf32> to vector<4x256xf32>
    %463 = vector.broadcast %460 : f32 to vector<4x256xf32>
    %464 = arith.mulf %463, %462 : vector<4x256xf32>
    %465 = arith.addf %458, %464 : vector<4x256xf32>
    %c511_i32 = arith.constant 511 : i32
    %466 = tpu.dynamic_rotate %149 by %c511_i32 dim 2 : vector<2x6x512xf32>, i32 -> vector<2x6x512xf32>
    %467 = tpu.iota {dimensions = array<i32: 2>} : vector<1x1x512xi32>
    %c128_i32_87 = arith.constant 128 : i32
    %468 = vector.broadcast %c128_i32_87 : i32 to vector<1x1x512xi32>
    %469 = arith.cmpi sge, %467, %468 : vector<1x1x512xi32>
    %c384_i32_88 = arith.constant 384 : i32
    %470 = vector.broadcast %c384_i32_88 : i32 to vector<1x1x512xi32>
    %471 = arith.cmpi slt, %467, %470 : vector<1x1x512xi32>
    %472 = arith.andi %469, %471 : vector<1x1x512xi1>
    %c128_i32_89 = arith.constant 128 : i32
    %473 = vector.broadcast %c128_i32_89 : i32 to vector<1x1x512xi32>
    %474 = arith.subi %467, %473 : vector<1x1x512xi32>
    %c16_i32_90 = arith.constant 16 : i32
    %c0_i32_91 = arith.constant 0 : i32
    %475 = arith.cmpi eq, %c16_i32_90, %c0_i32_91 : i32
    %c1_i32_92 = arith.constant 1 : i32
    %476 = arith.select %475, %c1_i32_92, %c16_i32_90 : i32
    %477 = vector.broadcast %476 : i32 to vector<1x1x512xi32>
    %478 = arith.remsi %474, %477 : vector<1x1x512xi32>
    %c0_i32_93 = arith.constant 0 : i32
    %479 = vector.broadcast %c0_i32_93 : i32 to vector<1x1x512xi32>
    %480 = arith.cmpi ne, %478, %479 : vector<1x1x512xi32>
    %c0_i32_94 = arith.constant 0 : i32
    %481 = vector.broadcast %c0_i32_94 : i32 to vector<1x1x512xi32>
    %482 = arith.cmpi slt, %478, %481 : vector<1x1x512xi32>
    %c0_i32_95 = arith.constant 0 : i32
    %483 = arith.cmpi slt, %476, %c0_i32_95 : i32
    %484 = vector.broadcast %483 : i1 to vector<1x1x512xi1>
    %485 = vector.broadcast %484 : vector<1x1x512xi1> to vector<1x1x512xi1>
    %486 = arith.xori %482, %485 : vector<1x1x512xi1>
    %487 = arith.andi %486, %480 : vector<1x1x512xi1>
    %488 = vector.broadcast %476 : i32 to vector<1x1x512xi32>
    %489 = arith.addi %478, %488 : vector<1x1x512xi32>
    %490 = arith.select %487, %489, %478 : vector<1x1x512xi1>, vector<1x1x512xi32>
    %c1_i32_96 = arith.constant 1 : i32
    %491 = vector.broadcast %c1_i32_96 : i32 to vector<1x1x512xi32>
    %492 = arith.addi %490, %491 : vector<1x1x512xi32>
    %c0_i32_97 = arith.constant 0 : i32
    %493 = vector.broadcast %c0_i32_97 : i32 to vector<1x1x512xi32>
    %494 = arith.cmpi sge, %492, %493 : vector<1x1x512xi32>
    %495 = arith.andi %472, %494 : vector<1x1x512xi1>
    %c1_i32_98 = arith.constant 1 : i32
    %496 = vector.broadcast %c1_i32_98 : i32 to vector<1x1x512xi32>
    %497 = arith.addi %490, %496 : vector<1x1x512xi32>
    %c16_i32_99 = arith.constant 16 : i32
    %498 = vector.broadcast %c16_i32_99 : i32 to vector<1x1x512xi32>
    %499 = arith.cmpi slt, %497, %498 : vector<1x1x512xi32>
    %500 = arith.andi %495, %499 : vector<1x1x512xi1>
    %cst_100 = arith.constant 0.000000e+00 : f32
    %501 = vector.shape_cast %500 : vector<1x1x512xi1> to vector<1x1x512xi1>
    %502 = vector.broadcast %501 : vector<1x1x512xi1> to vector<2x6x512xi1>
    %503 = vector.broadcast %cst_100 : f32 to vector<2x6x512xf32>
    %504 = arith.select %502, %466, %503 : vector<2x6x512xi1>, vector<2x6x512xf32>
    %c16_i32_101 = arith.constant 16 : i32
    %505 = tpu.dynamic_rotate %504 by %c16_i32_101 dim 2 : vector<2x6x512xf32>, i32 -> vector<2x6x512xf32>
    %506 = vector.extract_strided_slice %505 {offsets = [0, 0, 128], sizes = [2, 4, 256], strides = [1, 1, 1]} : vector<2x6x512xf32> to vector<2x4x256xf32>
    %507 = arith.index_cast %arg0 : i32 to index
    %c2_102 = arith.constant 2 : index
    %508 = memref.load %arg8[%507, %c2_102] : memref<2x54xf32, #tpu.memory_space<smem>>
    %509 = vector.extract_strided_slice %506 {offsets = [0, 0, 0], sizes = [1, 4, 256], strides = [1, 1, 1]} : vector<2x4x256xf32> to vector<1x4x256xf32>
    %510 = vector.shape_cast %509 : vector<1x4x256xf32> to vector<4x256xf32>
    %511 = vector.broadcast %508 : f32 to vector<4x256xf32>
    %512 = arith.mulf %511, %510 : vector<4x256xf32>
    %513 = arith.addf %465, %512 : vector<4x256xf32>
    %514 = arith.index_cast %arg0 : i32 to index
    %c29 = arith.constant 29 : index
    %515 = memref.load %arg8[%514, %c29] : memref<2x54xf32, #tpu.memory_space<smem>>
    %516 = vector.extract_strided_slice %506 {offsets = [1, 0, 0], sizes = [1, 4, 256], strides = [1, 1, 1]} : vector<2x4x256xf32> to vector<1x4x256xf32>
    %517 = vector.shape_cast %516 : vector<1x4x256xf32> to vector<4x256xf32>
    %518 = vector.broadcast %515 : f32 to vector<4x256xf32>
    %519 = arith.mulf %518, %517 : vector<4x256xf32>
    %520 = arith.addf %513, %519 : vector<4x256xf32>
    %521 = vector.extract_strided_slice %505 {offsets = [0, 1, 128], sizes = [2, 4, 256], strides = [1, 1, 1]} : vector<2x6x512xf32> to vector<2x4x256xf32>
    %522 = arith.index_cast %arg0 : i32 to index
    %c11 = arith.constant 11 : index
    %523 = memref.load %arg8[%522, %c11] : memref<2x54xf32, #tpu.memory_space<smem>>
    %524 = vector.extract_strided_slice %521 {offsets = [0, 0, 0], sizes = [1, 4, 256], strides = [1, 1, 1]} : vector<2x4x256xf32> to vector<1x4x256xf32>
    %525 = vector.shape_cast %524 : vector<1x4x256xf32> to vector<4x256xf32>
    %526 = vector.broadcast %523 : f32 to vector<4x256xf32>
    %527 = arith.mulf %526, %525 : vector<4x256xf32>
    %528 = arith.addf %520, %527 : vector<4x256xf32>
    %529 = arith.index_cast %arg0 : i32 to index
    %c38 = arith.constant 38 : index
    %530 = memref.load %arg8[%529, %c38] : memref<2x54xf32, #tpu.memory_space<smem>>
    %531 = vector.extract_strided_slice %521 {offsets = [1, 0, 0], sizes = [1, 4, 256], strides = [1, 1, 1]} : vector<2x4x256xf32> to vector<1x4x256xf32>
    %532 = vector.shape_cast %531 : vector<1x4x256xf32> to vector<4x256xf32>
    %533 = vector.broadcast %530 : f32 to vector<4x256xf32>
    %534 = arith.mulf %533, %532 : vector<4x256xf32>
    %535 = arith.addf %528, %534 : vector<4x256xf32>
    %536 = vector.extract_strided_slice %505 {offsets = [0, 2, 128], sizes = [2, 4, 256], strides = [1, 1, 1]} : vector<2x6x512xf32> to vector<2x4x256xf32>
    %537 = arith.index_cast %arg0 : i32 to index
    %c20 = arith.constant 20 : index
    %538 = memref.load %arg8[%537, %c20] : memref<2x54xf32, #tpu.memory_space<smem>>
    %539 = vector.extract_strided_slice %536 {offsets = [0, 0, 0], sizes = [1, 4, 256], strides = [1, 1, 1]} : vector<2x4x256xf32> to vector<1x4x256xf32>
    %540 = vector.shape_cast %539 : vector<1x4x256xf32> to vector<4x256xf32>
    %541 = vector.broadcast %538 : f32 to vector<4x256xf32>
    %542 = arith.mulf %541, %540 : vector<4x256xf32>
    %543 = arith.addf %535, %542 : vector<4x256xf32>
    %544 = arith.index_cast %arg0 : i32 to index
    %c47 = arith.constant 47 : index
    %545 = memref.load %arg8[%544, %c47] : memref<2x54xf32, #tpu.memory_space<smem>>
    %546 = vector.extract_strided_slice %536 {offsets = [1, 0, 0], sizes = [1, 4, 256], strides = [1, 1, 1]} : vector<2x4x256xf32> to vector<1x4x256xf32>
    %547 = vector.shape_cast %546 : vector<1x4x256xf32> to vector<4x256xf32>
    %548 = vector.broadcast %545 : f32 to vector<4x256xf32>
    %549 = arith.mulf %548, %547 : vector<4x256xf32>
    %550 = arith.addf %543, %549 : vector<4x256xf32>
    %551 = vector.extract_strided_slice %504 {offsets = [0, 0, 128], sizes = [2, 4, 256], strides = [1, 1, 1]} : vector<2x6x512xf32> to vector<2x4x256xf32>
    %552 = arith.index_cast %arg0 : i32 to index
    %c5_103 = arith.constant 5 : index
    %553 = memref.load %arg8[%552, %c5_103] : memref<2x54xf32, #tpu.memory_space<smem>>
    %554 = vector.extract_strided_slice %551 {offsets = [0, 0, 0], sizes = [1, 4, 256], strides = [1, 1, 1]} : vector<2x4x256xf32> to vector<1x4x256xf32>
    %555 = vector.shape_cast %554 : vector<1x4x256xf32> to vector<4x256xf32>
    %556 = vector.broadcast %553 : f32 to vector<4x256xf32>
    %557 = arith.mulf %556, %555 : vector<4x256xf32>
    %558 = arith.addf %550, %557 : vector<4x256xf32>
    %559 = arith.index_cast %arg0 : i32 to index
    %c32 = arith.constant 32 : index
    %560 = memref.load %arg8[%559, %c32] : memref<2x54xf32, #tpu.memory_space<smem>>
    %561 = vector.extract_strided_slice %551 {offsets = [1, 0, 0], sizes = [1, 4, 256], strides = [1, 1, 1]} : vector<2x4x256xf32> to vector<1x4x256xf32>
    %562 = vector.shape_cast %561 : vector<1x4x256xf32> to vector<4x256xf32>
    %563 = vector.broadcast %560 : f32 to vector<4x256xf32>
    %564 = arith.mulf %563, %562 : vector<4x256xf32>
    %565 = arith.addf %558, %564 : vector<4x256xf32>
    %566 = vector.extract_strided_slice %504 {offsets = [0, 1, 128], sizes = [2, 4, 256], strides = [1, 1, 1]} : vector<2x6x512xf32> to vector<2x4x256xf32>
    %567 = arith.index_cast %arg0 : i32 to index
    %c14 = arith.constant 14 : index
    %568 = memref.load %arg8[%567, %c14] : memref<2x54xf32, #tpu.memory_space<smem>>
    %569 = vector.extract_strided_slice %566 {offsets = [0, 0, 0], sizes = [1, 4, 256], strides = [1, 1, 1]} : vector<2x4x256xf32> to vector<1x4x256xf32>
    %570 = vector.shape_cast %569 : vector<1x4x256xf32> to vector<4x256xf32>
    %571 = vector.broadcast %568 : f32 to vector<4x256xf32>
    %572 = arith.mulf %571, %570 : vector<4x256xf32>
    %573 = arith.addf %565, %572 : vector<4x256xf32>
    %574 = arith.index_cast %arg0 : i32 to index
    %c41 = arith.constant 41 : index
    %575 = memref.load %arg8[%574, %c41] : memref<2x54xf32, #tpu.memory_space<smem>>
    %576 = vector.extract_strided_slice %566 {offsets = [1, 0, 0], sizes = [1, 4, 256], strides = [1, 1, 1]} : vector<2x4x256xf32> to vector<1x4x256xf32>
    %577 = vector.shape_cast %576 : vector<1x4x256xf32> to vector<4x256xf32>
    %578 = vector.broadcast %575 : f32 to vector<4x256xf32>
    %579 = arith.mulf %578, %577 : vector<4x256xf32>
    %580 = arith.addf %573, %579 : vector<4x256xf32>
    %581 = vector.extract_strided_slice %504 {offsets = [0, 2, 128], sizes = [2, 4, 256], strides = [1, 1, 1]} : vector<2x6x512xf32> to vector<2x4x256xf32>
    %582 = arith.index_cast %arg0 : i32 to index
    %c23 = arith.constant 23 : index
    %583 = memref.load %arg8[%582, %c23] : memref<2x54xf32, #tpu.memory_space<smem>>
    %584 = vector.extract_strided_slice %581 {offsets = [0, 0, 0], sizes = [1, 4, 256], strides = [1, 1, 1]} : vector<2x4x256xf32> to vector<1x4x256xf32>
    %585 = vector.shape_cast %584 : vector<1x4x256xf32> to vector<4x256xf32>
    %586 = vector.broadcast %583 : f32 to vector<4x256xf32>
    %587 = arith.mulf %586, %585 : vector<4x256xf32>
    %588 = arith.addf %580, %587 : vector<4x256xf32>
    %589 = arith.index_cast %arg0 : i32 to index
    %c50 = arith.constant 50 : index
    %590 = memref.load %arg8[%589, %c50] : memref<2x54xf32, #tpu.memory_space<smem>>
    %591 = vector.extract_strided_slice %581 {offsets = [1, 0, 0], sizes = [1, 4, 256], strides = [1, 1, 1]} : vector<2x4x256xf32> to vector<1x4x256xf32>
    %592 = vector.shape_cast %591 : vector<1x4x256xf32> to vector<4x256xf32>
    %593 = vector.broadcast %590 : f32 to vector<4x256xf32>
    %594 = arith.mulf %593, %592 : vector<4x256xf32>
    %595 = arith.addf %588, %594 : vector<4x256xf32>
    %c496_i32_104 = arith.constant 496 : i32
    %596 = tpu.dynamic_rotate %504 by %c496_i32_104 dim 2 : vector<2x6x512xf32>, i32 -> vector<2x6x512xf32>
    %597 = vector.extract_strided_slice %596 {offsets = [0, 0, 128], sizes = [2, 4, 256], strides = [1, 1, 1]} : vector<2x6x512xf32> to vector<2x4x256xf32>
    %598 = arith.index_cast %arg0 : i32 to index
    %c8 = arith.constant 8 : index
    %599 = memref.load %arg8[%598, %c8] : memref<2x54xf32, #tpu.memory_space<smem>>
    %600 = vector.extract_strided_slice %597 {offsets = [0, 0, 0], sizes = [1, 4, 256], strides = [1, 1, 1]} : vector<2x4x256xf32> to vector<1x4x256xf32>
    %601 = vector.shape_cast %600 : vector<1x4x256xf32> to vector<4x256xf32>
    %602 = vector.broadcast %599 : f32 to vector<4x256xf32>
    %603 = arith.mulf %602, %601 : vector<4x256xf32>
    %604 = arith.addf %595, %603 : vector<4x256xf32>
    %605 = arith.index_cast %arg0 : i32 to index
    %c35 = arith.constant 35 : index
    %606 = memref.load %arg8[%605, %c35] : memref<2x54xf32, #tpu.memory_space<smem>>
    %607 = vector.extract_strided_slice %597 {offsets = [1, 0, 0], sizes = [1, 4, 256], strides = [1, 1, 1]} : vector<2x4x256xf32> to vector<1x4x256xf32>
    %608 = vector.shape_cast %607 : vector<1x4x256xf32> to vector<4x256xf32>
    %609 = vector.broadcast %606 : f32 to vector<4x256xf32>
    %610 = arith.mulf %609, %608 : vector<4x256xf32>
    %611 = arith.addf %604, %610 : vector<4x256xf32>
    %612 = vector.extract_strided_slice %596 {offsets = [0, 1, 128], sizes = [2, 4, 256], strides = [1, 1, 1]} : vector<2x6x512xf32> to vector<2x4x256xf32>
    %613 = arith.index_cast %arg0 : i32 to index
    %c17 = arith.constant 17 : index
    %614 = memref.load %arg8[%613, %c17] : memref<2x54xf32, #tpu.memory_space<smem>>
    %615 = vector.extract_strided_slice %612 {offsets = [0, 0, 0], sizes = [1, 4, 256], strides = [1, 1, 1]} : vector<2x4x256xf32> to vector<1x4x256xf32>
    %616 = vector.shape_cast %615 : vector<1x4x256xf32> to vector<4x256xf32>
    %617 = vector.broadcast %614 : f32 to vector<4x256xf32>
    %618 = arith.mulf %617, %616 : vector<4x256xf32>
    %619 = arith.addf %611, %618 : vector<4x256xf32>
    %620 = arith.index_cast %arg0 : i32 to index
    %c44 = arith.constant 44 : index
    %621 = memref.load %arg8[%620, %c44] : memref<2x54xf32, #tpu.memory_space<smem>>
    %622 = vector.extract_strided_slice %612 {offsets = [1, 0, 0], sizes = [1, 4, 256], strides = [1, 1, 1]} : vector<2x4x256xf32> to vector<1x4x256xf32>
    %623 = vector.shape_cast %622 : vector<1x4x256xf32> to vector<4x256xf32>
    %624 = vector.broadcast %621 : f32 to vector<4x256xf32>
    %625 = arith.mulf %624, %623 : vector<4x256xf32>
    %626 = arith.addf %619, %625 : vector<4x256xf32>
    %627 = vector.extract_strided_slice %596 {offsets = [0, 2, 128], sizes = [2, 4, 256], strides = [1, 1, 1]} : vector<2x6x512xf32> to vector<2x4x256xf32>
    %628 = arith.index_cast %arg0 : i32 to index
    %c26 = arith.constant 26 : index
    %629 = memref.load %arg8[%628, %c26] : memref<2x54xf32, #tpu.memory_space<smem>>
    %630 = vector.extract_strided_slice %627 {offsets = [0, 0, 0], sizes = [1, 4, 256], strides = [1, 1, 1]} : vector<2x4x256xf32> to vector<1x4x256xf32>
    %631 = vector.shape_cast %630 : vector<1x4x256xf32> to vector<4x256xf32>
    %632 = vector.broadcast %629 : f32 to vector<4x256xf32>
    %633 = arith.mulf %632, %631 : vector<4x256xf32>
    %634 = arith.addf %626, %633 : vector<4x256xf32>
    %635 = arith.index_cast %arg0 : i32 to index
    %c53 = arith.constant 53 : index
    %636 = memref.load %arg8[%635, %c53] : memref<2x54xf32, #tpu.memory_space<smem>>
    %637 = vector.extract_strided_slice %627 {offsets = [1, 0, 0], sizes = [1, 4, 256], strides = [1, 1, 1]} : vector<2x4x256xf32> to vector<1x4x256xf32>
    %638 = vector.shape_cast %637 : vector<1x4x256xf32> to vector<4x256xf32>
    %639 = vector.broadcast %636 : f32 to vector<4x256xf32>
    %640 = arith.mulf %639, %638 : vector<4x256xf32>
    %641 = arith.addf %634, %640 : vector<4x256xf32>
    %c0_105 = arith.constant 0 : index
    %c1_106 = arith.constant 1 : index
    %c128_107 = arith.constant 128 : index
    %642 = vector.load %arg12[%c0_105, %c1_106, %c128_107] : memref<2x6x512xf32, #tpu.memory_space<vmem>>, vector<1x4x256xf32>
    %643 = vector.shape_cast %642 : vector<1x4x256xf32> to vector<4x256xf32>
    %644 = vector.shape_cast %641 : vector<4x256xf32> to vector<1x4x256xf32>
    tpu.vector_store %arg12[%c0_105, %c1_106, %c128_107], %644 {strides = array<i32>} : memref<2x6x512xf32, #tpu.memory_space<vmem>>, vector<1x4x256xf32>,
    %645 = arith.index_cast %arg0 : i32 to index
    %646 = memref.load %arg1[%645] : memref<2xf32, #tpu.memory_space<smem>>
    %c0_108 = arith.constant 0 : index
    %c0_109 = arith.constant 0 : index
    %c0_110 = arith.constant 0 : index
    %c0_111 = arith.constant 0 : index
    %647 = vector.load %arg10[%c0_108, %c0_109, %c0_110, %c0_111] : memref<1x1x4x256xf32, #tpu.memory_space<vmem>>, vector<1x1x4x256xf32>
    %648 = vector.shape_cast %647 : vector<1x1x4x256xf32> to vector<1x4x256xf32>
    %c0_112 = arith.constant 0 : index
    %c1_113 = arith.constant 1 : index
    %c128_114 = arith.constant 128 : index
    %649 = vector.load %arg12[%c0_112, %c1_113, %c128_114] : memref<2x6x512xf32, #tpu.memory_space<vmem>>, vector<1x4x256xf32>
    %650 = vector.broadcast %646 : f32 to vector<1x4x256xf32>
    %651 = arith.mulf %650, %649 : vector<1x4x256xf32>
    %cst_115 = arith.constant 1.000000e+00 : f32
    %652 = arith.subf %cst_115, %646 : f32
    %653 = vector.broadcast %652 : f32 to vector<1x4x256xf32>
    %654 = arith.mulf %653, %648 : vector<1x4x256xf32>
    %655 = arith.addf %651, %654 : vector<1x4x256xf32>
    %656 = arith.mulf %648, %648 : vector<1x4x256xf32>
    %657 = vector.shape_cast %656 : vector<1x4x256xf32> to vector<1x1x4x256xf32>
    %cst_116 = arith.constant dense<0.000000e+00> : vector<1xf32>
    %658 = vector.multi_reduction <add>, %657, %cst_116 [1, 2, 3] : vector<1x1x4x256xf32> to vector<1xf32>
    %659 = vector.shape_cast %658 : vector<1xf32> to vector<1x1x1x1xf32>
    %660 = vector.extract %659[0, 0, 0, 0] : f32 from vector<1x1x1x1xf32>
    %661 = math.sqrt %660 : f32
    %662 = arith.mulf %655, %655 : vector<1x4x256xf32>
    %663 = vector.shape_cast %662 : vector<1x4x256xf32> to vector<1x1x4x256xf32>
    %cst_117 = arith.constant dense<0.000000e+00> : vector<1xf32>
    %664 = vector.multi_reduction <add>, %663, %cst_117 [1, 2, 3] : vector<1x1x4x256xf32> to vector<1xf32>
    %665 = vector.shape_cast %664 : vector<1xf32> to vector<1x1x1x1xf32>
    %666 = vector.extract %665[0, 0, 0, 0] : f32 from vector<1x1x1x1xf32>
    %667 = math.sqrt %666 : f32
    %cst_118 = arith.constant 9.99999974E-6 : f32
    %668 = arith.addf %667, %cst_118 : f32
    %669 = arith.divf %661, %668 : f32
    %670 = vector.broadcast %669 : f32 to vector<1x4x256xf32>
    %671 = arith.mulf %655, %670 : vector<1x4x256xf32>
    %c0_119 = arith.constant 0 : index
    %c0_120 = arith.constant 0 : index
    %c0_121 = arith.constant 0 : index
    %c0_122 = arith.constant 0 : index
    %672 = vector.load %arg11[%c0_119, %c0_120, %c0_121, %c0_122] : memref<1x1x4x256xf32, #tpu.memory_space<vmem>>, vector<1x1x4x256xf32>
    %673 = vector.shape_cast %672 : vector<1x1x4x256xf32> to vector<1x4x256xf32>
    %674 = vector.shape_cast %671 : vector<1x4x256xf32> to vector<1x1x4x256xf32>
    tpu.vector_store %arg11[%c0_119, %c0_120, %c0_121, %c0_122], %674 {strides = array<i32>} : memref<1x1x4x256xf32, #tpu.memory_space<vmem>>, vector<1x1x4x256xf32>,
    return
  }
  func.func @transform_0(%arg0: i32) -> i32 {
    %c0_i32 = arith.constant 0 : i32
    %c0_i32_0 = arith.constant 0 : i32
    return %c0_i32 : i32
  }
  func.func @transform_1(%arg0: i32) -> (i32, i32) {
    %c0_i32 = arith.constant 0 : i32
    %c0_i32_0 = arith.constant 0 : i32
    %c0_i32_1 = arith.constant 0 : i32
    return %c0_i32, %c0_i32_0 : i32, i32
  }
  func.func @transform_2(%arg0: i32) -> (i32, i32) {
    %c0_i32 = arith.constant 0 : i32
    %c0_i32_0 = arith.constant 0 : i32
    %c0_i32_1 = arith.constant 0 : i32
    return %c0_i32, %c0_i32_0 : i32, i32
  }
  func.func @transform_3(%arg0: i32) -> (i32, i32) {
    %c0_i32 = arith.constant 0 : i32
    %c0_i32_0 = arith.constant 0 : i32
    %c0_i32_1 = arith.constant 0 : i32
    return %c0_i32, %c0_i32_0 : i32, i32
  }
  func.func @transform_4(%arg0: i32) -> (i32, i32) {
    %c0_i32 = arith.constant 0 : i32
    %c0_i32_0 = arith.constant 0 : i32
    %c0_i32_1 = arith.constant 0 : i32
    return %c0_i32, %c0_i32_0 : i32, i32
  }
  func.func @transform_5(%arg0: i32) -> (i32, i32) {
    %c0_i32 = arith.constant 0 : i32
    %c0_i32_0 = arith.constant 0 : i32
    %c0_i32_1 = arith.constant 0 : i32
    return %c0_i32, %c0_i32_0 : i32, i32
  }
  func.func @transform_6(%arg0: i32) -> (i32, i32) {
    %c0_i32 = arith.constant 0 : i32
    %c0_i32_0 = arith.constant 0 : i32
    %c0_i32_1 = arith.constant 0 : i32
    return %c0_i32, %c0_i32_0 : i32, i32
  }
  func.func @transform_7(%arg0: i32) -> (i32, i32) {
    %c0_i32 = arith.constant 0 : i32
    %c0_i32_0 = arith.constant 0 : i32
    %c0_i32_1 = arith.constant 0 : i32
    return %c0_i32, %c0_i32_0 : i32, i32
  }
  func.func @transform_8(%arg0: i32) -> (i32, i32) {
    %c0_i32 = arith.constant 0 : i32
    %c0_i32_0 = arith.constant 0 : i32
    %c0_i32_1 = arith.constant 0 : i32
    return %c0_i32, %c0_i32_0 : i32, i32
  }
  func.func @transform_9(%arg0: i32) -> (i32, i32, i32, i32) {
    %c0_i32 = arith.constant 0 : i32
    %c0_i32_0 = arith.constant 0 : i32
    %c0_i32_1 = arith.constant 0 : i32
    %c0_i32_2 = arith.constant 0 : i32
    return %arg0, %c0_i32, %c0_i32_0, %c0_i32_1 : i32, i32, i32, i32
  }
  func.func @transform_10(%arg0: i32) -> (i32, i32, i32, i32) {
    %c0_i32 = arith.constant 0 : i32
    %c0_i32_0 = arith.constant 0 : i32
    %c0_i32_1 = arith.constant 0 : i32
    %c0_i32_2 = arith.constant 0 : i32
    return %arg0, %c0_i32, %c0_i32_0, %c0_i32_1 : i32, i32, i32, i32
  }
}

</mosaic_0001>

<bundles_post_ra>
// kernel: tpu_custom_call.1
= control target key start
LH: loop header
LB: loop body
LE: loop exit
PB: predicated region body
PF: predicated region fallthrough
CT: control target
= control target key end

     0   :  { %s3241_s0 = inlined_call_operand.vmem [shape: f32[2], index: 0, kind: input, shape index: {}]   ;;  %s3242_s1 = inlined_call_operand.vmem [shape: f32[2,2], index: 1, kind: input, shape index: {}]   ;;  %s3243_s2 = inlined_call_operand.hbm [shape: f32[2,2], index: 2, kind: input, shape index: {}]   ;;  %s3244_s3 = inlined_call_operand.hbm [shape: f32[2,4], index: 3, kind: input, shape index: {}]   ;;  %s3245_s4 = inlined_call_operand.vmem [shape: f32[2,2], index: 4, kind: input, shape index: {}]   ;;  %s3246_s5 = inlined_call_operand.hbm [shape: f32[2,4], index: 5, kind: input, shape index: {}]   ;;  %s3247_s6 = inlined_call_operand.vmem [shape: f32[2,2], index: 6, kind: input, shape index: {}]   ;;  %s3248_s7 = inlined_call_operand.hbm [shape: f32[2,54], index: 7, kind: input, shape index: {}]   ;;  %s3249_s8 = inlined_call_operand.vmem [shape: f32[2,1], index: 8, kind: input, shape index: {}]   ;;  %s3250_s9 = inlined_call_operand.hbm [shape: f32[2,1,4,256], index: 9, kind: input, shape index: {}]   ;;  %s3251_s10 = inlined_call_operand.hbm [shape: f32[2,1,4,256], index: 10, kind: output, shape index: {}]  }
   0x1   :  { %3257 = sst [smem:[#allocation33_spill]] %s3241_s0 }
   0x2   :  { %3258 = sst [smem:[#allocation34_spill]] %s3242_s1 }
   0x3   :  { %3259 = sst [smem:[#allocation35_spill]] %s3243_s2 }
   0x4   :  { %3260 = sst [smem:[#allocation36_spill]] %s3244_s3 }
   0x5   :  { %3261 = sst [smem:[#allocation37_spill]] %s3245_s4 }
   0x6   :  { %3262 = sst [smem:[#allocation38_spill]] %s3246_s5 }
   0x7   :  { %15 = vsyncpa [#allocation7], 0 }
   0x8   :  { %16 = vsyncpa [#allocation9], 0 }
   0x9   :  { %17 = vsyncpa [#allocation6], 0 }
   0xa   :  { %18 = vsyncpa [#allocation12], 0 }
   0xb   :  { %19 = vsyncpa [#allocation16], 0 }
   0xc   :  { %20 = vsyncpa [#allocation18], 0 }
   0xd   :  { %21 = vsyncpa [#allocation4], 0 }
   0xe   :  { %23 = vsyncpa [#allocation4 + $0x1], 0 }
   0xf   :  { %24 = vsyncpa [#allocation5], 0 }
  0x10   :  { %26 = vsyncpa [#allocation5 + $0x1], 0  ;;  %s2433_s13 = smov 0   ;;  %s2435_s14 = smov 0  }
  0x11   :  { %s2437_s15 = smov 0   ;;  %s2439_s16 = smov 0  }
  0x12 LB: > { %s3263_s1 = sld [smem:[#allocation34_spill]]  ;;  %s2457_s20 = sadd.s32 4294967295, %s2362_s16   ;;  %s2362_s16 = sphi %s2439_s16, %s3286_s16   ;;  %s2358_s15 = sphi %s2437_s15, %s3285_s15   ;;  %s2354_s14 = sphi %s2435_s14, %s3284_s14   ;;  %s2350_s13 = sphi %s2433_s13, %s3283_s13  }
  0x13   : > { %p1858_p0 = scmp.ge.s32.totalorder %s2362_s16, 1  ;;  %p242_p1 = scmp.eq.s32.totalorder %s2457_s20, 0 }
  0x14   : > { %p278_p2 = scmp.lt.s32.totalorder %s2362_s16, 3  ;;  %s3265_s3 = sld [smem:[#allocation36_spill]] }
  0x15   : > { %s350_s27 = sshll.u32 %s3247_s6, 4  ;;  %s3267_s0 = sld [smem:[#allocation33_spill]]  ;;  %s351_s27 = int_to_ptr.vmem [resolvable:$true] %s350_s27 }
  0x16   : > { %p2462_p3 = pnand %p1858_p0, %p278_p2  ;;  %s2364_s12 = smov [#allocation8]  }
  0x17   : > { %s2365_s17 = smov [#allocation11]   ;;  %s2366_s18 = smov [#allocation15]  }
  0x18   : > { %s300_s19 = sshll.u32 %s3263_s1, 4  ;;  %p1947_p5 = pneg %p2462_p3  ;;  %s301_s19 = int_to_ptr.vmem [resolvable:$true] %s300_s19 }
  0x19   : > { %s2367_s22 = smov [#allocation3]   ;;  %s3268_s2 = sld [smem:[#allocation35_spill]] }
  0x1a   : > { %s320_s24 = sshll.u32 %s3265_s3, 4  ;;  %p2477_p6 = pnand %p1947_p5, %p242_p1  ;;  %s321_s24 = int_to_ptr.hbm [resolvable:$true] %s320_s24 }
  0x1b   : > { %s290_s11 = sshll.u32 %s3267_s0, 4  ;;  %s3269_s4 = sld [smem:[#allocation37_spill]]  ;;  %s291_s11 = int_to_ptr.vmem [resolvable:$true] %s290_s11 }
  0x1c   : > { %1953 = dma.vmem_to_smem (!%p2477_p6), %s301_s19, 32, %s2364_s12, [#allocation9]  }
  0x1d   : > { %1959 = dma.hbm_to_smem (!%p2477_p6), %s321_s24, 32, %s2365_s17, [#allocation12]  }
  0x1e   : > { %1968 = dma.vmem_to_smem (!%p2477_p6), %s351_s27, 32, %s2366_s18, [#allocation16]  }
  0x1f   : > { %1950 = dma.vmem_to_smem (!%p2477_p6), %s291_s11, 16, %s2367_s22, [#allocation7]  }
  0x20   : > { %s310_s26 = sshll.u32 %s3268_s2, 4  ;;  %s2368_s12 = smov [#allocation10]   ;;  %s311_s26 = int_to_ptr.hbm [resolvable:$true] %s310_s26 }
  0x21   : > { %s330_s19 = sshll.u32 %s3269_s4, 4  ;;  %s2369_s24 = smov [#allocation13]   ;;  %s331_s19 = int_to_ptr.vmem [resolvable:$true] %s330_s19 }
  0x22   : > { %1956 = dma.hbm_to_smem (!%p2477_p6), %s311_s26, 32, %s2368_s12, [#allocation6]  }
  0x23   : > { %1962 = dma.vmem_to_smem (!%p2477_p6), %s331_s19, 32, %s2369_s24, [#allocation9]  }
  0x24   : > { %s3270_s5 = sld [smem:[#allocation38_spill]]  ;;  %s360_s23 = sshll.u32 %s3248_s7, 4  ;;  %s361_s23 = int_to_ptr.hbm [resolvable:$true] %s360_s23 }
  0x25   : > { %s2370_s25 = smov [#allocation14]   ;;  %s2371_s26 = smov [#allocation17]  }
  0x26   : > { %1971 = dma.hbm_to_smem (!%p2477_p6), %s361_s23, 32, %s2371_s26, [#allocation18]  }
  0x27   : > { %s370_s19 = sshll.u32 %s3249_s8, 4  ;;  %s2372_s12 = smov [#allocation19]   ;;  %s371_s19 = int_to_ptr.vmem [resolvable:$true] %s370_s19 }
  0x28   : > { %1974 = dma.vmem_to_smem (!%p2477_p6), %s371_s19, 32, %s2372_s12, [#allocation16]  }
  0x29   : > { %s1857_s24 = sadd.s32 4294967294, %s2362_s16   ;;  %s2519_s27 = sadd.s32 1, %s2362_s16  }
  0x2a   : > { %s340_s17 = sshll.u32 %s3270_s5, 4  ;;  %s228_s11 = sadd.s32 1, %s2358_s15  ;;  %s341_s17 = int_to_ptr.hbm [resolvable:$true] %s340_s17 }
  0x2b   : > { %1965 = dma.hbm_to_smem (!%p2477_p6), %s341_s17, 32, %s2370_s25, [#allocation12]  }
  0x2c   : > { %s225_s17 = ssub.s32 %s2362_s16, %s2519_s27  ;;  %p235_p7 = scmp.ne.s32.totalorder %s2358_s15, %s2354_s14 }
  0x2d   : > { %p226_p8 = scmp.eq.s32.totalorder %s225_s17, 0  ;;  %p236_p9 = scmp.eq.s32.totalorder %s2362_s16, 0 }
  0x2e   : > { %p241_p10 = scmp.ne.s32.totalorder %s2354_s14, %s2350_s13  ;;  %p265_p11 = scmp.eq.s32.totalorder %s2457_s20, 1 }
  0x2f   : > { %s2531_s18 = scalar_select %p226_p8, %s2358_s15, %s228_s11  }
  0x30   : > { %p2535_p12 = por %p242_p1, %p241_p10  ;;  %p2539_p13 = por %p265_p11, %p235_p7 }
  0x31   : > { %p271_p0 = scmp.eq.s32.totalorder %s1857_s24, 1  ;;  %p237_p2 = por %p236_p9, %p235_p7 }
  0x32   : > { %s381_s23 = sand.u32 1, %s2358_s15   ;;  %p1992_p6 = scmp.lt.s32.totalorder %s2362_s16, 2 }
  0x33   : > { %p2544_p5 = por %p271_p0, %p241_p10  ;;  %s1869_s26 = sshll.u32 %s381_s23, 3 }
  0x34   : > { %s1895_s29 = sshll.u32 %s2362_s16, 3  ;;  %s385_s17 = scalar_lea.vmem [#allocation20], %s1869_s26 }
  0x35   : > { %s390_s12 = scalar_lea.hbm %s3250_s9, %s1895_s29  ;;  %s394_s0 = sshll.u32 %s385_s17, 4  ;;  %s395_s0 = int_to_ptr.vmem [resolvable:$true] %s394_s0 }
  0x36   : > { %s392_s11 = sshll.u32 %s390_s12, 4  ;;  %p2553_p8 = pnand %p1992_p6, %p237_p2  ;;  %s393_s11 = int_to_ptr.hbm [resolvable:$true] %s392_s11 }
  0x37   : > { %s382_s1 = scalar_lea.sflag [#allocation4], %s381_s23  ;;  %s2230_s2 = sshra.s32 %s393_s11, 4  ;;  %s2231_s2 = int_to_ptr.hbm [resolvable:$true] %s2230_s2 }
  0x38   : > { %s2232_s3 = scalar_lea.hbm %s2231_s2, 8  ;;  %p2234_p9 = pneg %p2553_p8 }
  0x39   : > { %p2233_p7 = scmp.ne.s32.totalorder %s2231_s2, %s2232_s3  ;;  %s2237_s26 = scalar_lea.hbm %s3250_s9, 16 }
  0x3a   : > { %p2238_p0 = scmp.lt.s32.totalorder %s2231_s2, %s3250_s9  ;;  %p2239_p2 = scmp.lt.s32.totalorder %s2237_s26, %s2232_s3 }
  0x3b   : > { %p2235_p10 = pnand %p2234_p9, %p2233_p7 }
  0x3c   : > { %p2240_p6 = por %p2239_p2, %p2238_p0 }
  0x3d   : > { %p2236_p11 = pneg %p2235_p10 }
  0x3f   : > { %p2241_p4 = pnand %p2240_p6, %p2236_p11 }
  0x41   : > { %2244 = shalt.err (!%p2241_p4)
}
  0x42   : > { %1978 = dma.hbm_to_vmem [thread:$0]  (!%p2553_p8), %s393_s11, 128, %s395_s0, %s382_s1  }
  0x43   : > { %403 = sbr.rel (%p2462_p3) target bundleno = 955 (0x3bb), region = 60 }
  0x48   : > { %2305 = dma.done.wait (%p242_p1), [#allocation7], 16  }
  0x49   : > { %2307 = vsyncadd (%p242_p1), [#allocation7], 4294967280 }
  0x4a   : > { %2309 = dma.done.wait (%p242_p1), [#allocation9], 32  }
  0x4b   : > { %2311 = vsyncadd (%p242_p1), [#allocation9], 4294967264 }
  0x4c   : > { %2313 = dma.done.wait (%p242_p1), [#allocation6], 32  }
  0x4d   : > { %2315 = vsyncadd (%p242_p1), [#allocation6], 4294967264 }
  0x4e   : > { %2317 = dma.done.wait (%p242_p1), [#allocation12], 32  }
  0x4f   : > { %2319 = vsyncadd (%p242_p1), [#allocation12], 4294967264 }
  0x50   : > { %2321 = dma.done.wait (%p242_p1), [#allocation9], 32  }
  0x51   : > { %2323 = vsyncadd (%p242_p1), [#allocation9], 4294967264 }
  0x52   : > { %2325 = dma.done.wait (%p242_p1), [#allocation12], 32  }
  0x53   : > { %2327 = vsyncadd (%p242_p1), [#allocation12], 4294967264 }
  0x54   : > { %2329 = dma.done.wait (%p242_p1), [#allocation16], 32  }
  0x55   : > { %2331 = vsyncadd (%p242_p1), [#allocation16], 4294967264 }
  0x56   : > { %2333 = dma.done.wait (%p242_p1), [#allocation18], 32  }
  0x57   : > { %2335 = vsyncadd (%p242_p1), [#allocation18], 4294967264 }
  0x58   : > { %2337 = dma.done.wait (%p242_p1), [#allocation16], 32  }
  0x59   : > { %2339 = vsyncadd (%p242_p1), [#allocation16], 4294967264  ;;  %s2606_s0 = sand.u32 1, %s2354_s14  }
  0x5a   : > { %s3252_s1 = sshll.u32 %s2606_s0, 3  ;;  %s451_s2 = scalar_lea.sflag [#allocation4], %s2606_s0 }
  0x5b   : > { %s2612_s3 = scalar_lea.vmem [#allocation20], %s3252_s1 }
  0x5c   : > { %2341 = dma.done.wait (%p2535_p12), %s451_s2, 128  }
  0x5d   : > { %2343 = vsyncadd (%p2535_p12), %s451_s2, 4294967168 }
  0x5e   : > { %460 = sfence }
  0x5f   : > { %v497_v0 = vlaneseq  ;;  %v2373_v1 = vmov 0.0   ;;  %v513_v2 = vld [vmem:[%s2612_s3] sm:$0xff]  ;;  %s2629_s21 = sshll.u32 %s2457_s20, 7  ;;  %s2374_s28 = smov 1  }
  0x60   : > { %493 = vst [vmem:[#allocation2] sm:$0x3f] %v2373_v1  ;;  %s2636_s23 = sadd.s32 1, %s2629_s21  ;;  %s532_s11 = sld [smem:[#allocation8 + %s2629_s21]] }
  0x61   : > { %494 = vst [vmem:[#allocation2 + $0x20] sm:$0x3f] %v2373_v1  ;;  %vm499_vm0 = vcmp.lt.s32.totalorder %v497_v0, 256  ;;  %s538_s17 = sld [smem:[#allocation8 + %s2636_s23]]  ;;  %s2646_s26 = sadd.s32 2, %s2629_s21 }
  0x62   : > { %495 = vst [vmem:[#allocation2 + $0x18] sm:$0x3f] %v2373_v1  ;;  %s527_s24 = sld [smem:[#allocation10 + %s2629_s21]]  ;;  %s2652_s12 = sadd.s32 3, %s2629_s21 }
  0x63   : > { %496 = vst [vmem:[#allocation2 + $0x38] sm:$0x3f] %v2373_v1  ;;  %s530_s29 = sld [smem:[#allocation10 + %s2636_s23]]  ;;  %s854_s1 = sadd.s32 18, %s2629_s21 }
  0x64   : > { %502 = vst.msk [vmem:[#allocation2 + $0x8] ss:$8 sm:$0x3] %vm499_vm0, %v2373_v1  ;;  %s2643_s30 = sld [smem:[#allocation13 + %s2629_s21]] }
  0x65   : > { %505 = vst.msk [vmem:[#allocation2 + $0x28] ss:$8 sm:$0x3] %vm499_vm0, %v2373_v1  ;;  %s2649_s19 = sld [smem:[#allocation11 + %s2629_s21]] }
  0x66   : > { %508 = vst.msk [vmem:[#allocation2 + $0xd] ss:$8 sm:$0x3] %vm499_vm0, %v2373_v1  ;;  %v533_v10 = vstv %s532_s11  ;;  %s2655_s2 = sld [smem:[#allocation11 + %s2636_s23]] }
  0x67   : > { %v659_v3 = vld [vmem:[#allocation2] sm:$0x3f]  ;;  %511 = vst.msk [vmem:[#allocation2 + $0x2d] ss:$8 sm:$0x3] %vm499_vm0, %v2373_v1  ;;  %v539_v11 = vstv %s538_s17  ;;  %s2658_s11 = sld [smem:[#allocation11 + %s2646_s26]] }
  0x68   : > { %v663_v4 = vld [vmem:[#allocation2 + $0x20] sm:$0x3f]  ;;  %515 = vst [vmem:[#allocation1] ss:$2 sm:$0xff] %v513_v2  ;;  %v528_v13 = vstv %s527_s24  ;;  %s2661_s17 = sld [smem:[#allocation11 + %s2652_s12]] }
  0x69   : > { %v2631_v5 = vpack.i.bf16 %v663_v4, %v659_v3  ;;  %v531_v14 = vstv %s530_s29  ;;  %s2664_s24 = sld [smem:[#allocation13 + %s2636_s23]] }
  0x6a   : > { %v566_v37 = vstv %s2643_s30  ;;  %s2673_s29 = sld [smem:[#allocation15 + %s2629_s21]] }
  0x6b   : > { %2050 = vrot.lane.b32.xlu0 %v2631_v5, %s2374_s28  ;;  %v570_v32 = vstv %s2649_s19  ;;  %s2676_s30 = sld [smem:[#allocation14 + %s2629_s21]] }
  0x6c   : > { %v576_v34 = vstv %s2655_s2  ;;  %s2679_s19 = sld [smem:[#allocation14 + %s2636_s23]] }
  0x6d   : > { %v583_v33 = vstv %s2658_s11  ;;  %s2682_s2 = sld [smem:[#allocation14 + %s2646_s26]] }
  0x6e   : > { %v590_v35 = vstv %s2661_s17  ;;  %s2685_s11 = sld [smem:[#allocation14 + %s2652_s12]] }
  0x6f   : > { %v517_v6 = vld.sshfl [vmem:[#allocation1 + $0x8] sm:$0xff pattern:$0x75316420]  ;;  %v516_v7 = vld.sshfl [vmem:[#allocation1] sm:$0xff pattern:$0x75316420]  ;;  %v568_v38 = vstv %s2664_s24 }
  0x70   : > { %v519_v8 = vrot.slane %v517_v6, 7  ;;  %v518_v9 = vrot.slane %v516_v7, 7  ;;  %s617_s17 = sld [smem:[#allocation15 + %s2636_s23]]  ;;  %s3255_s24 = smov 16  }
  0x71   : > { %v620_v4 = vstv %s2676_s30  ;;  %s821_s30 = sadd.s32 27, %s2629_s21  ;;  %s2820_s4 = sld [smem:[#allocation17 + %s854_s1]] }
  0x72   : > { %523 = vst [vmem:[#allocation2 + $0x10] sm:$0x1e] %v519_v8  ;;  %v626_v6 = vstv %s2679_s19  ;;  %v616_v8 = vstv %s2673_s29  ;;  %s3253_s29 = smov 112   ;;  %s828_s19 = sadd.s32 9, %s2629_s21 }
  0x73   : > { %522 = vst [vmem:[#allocation2 + $0x8] sm:$0x1e] %v518_v9  ;;  %v632_v9 = vstv %s2682_s2  ;;  %s2803_s2 = sld [smem:[#allocation17 + %s821_s30]]  ;;  %s3277_s30 = smov 16  }
  0x74   : > { %s906_s1 = sadd.s32 39, %s2629_s21 }
  0x79   : > { %v525_v12 = vld [vmem:[#allocation2 + $0x10] sm:$0x3f] }
  0x7a   : > { %v535_v15 = vmul.f32 %v533_v10, %v525_v12  ;;  %v541_v16 = vmul.f32 %v539_v11, %v525_v12  ;;  %v524_v17 = vld [vmem:[#allocation2 + $0x8] sm:$0x3f]  ;;  %v638_v12 = vstv %s2685_s11  ;;  %s841_s11 = sadd.s32 36, %s2629_s21 }
  0x7b   : > { %v534_v18 = vmul.f32 %v533_v10, %v524_v17  ;;  %v540_v19 = vmul.f32 %v539_v11, %v524_v17 }
  0x7c   : > { %v537_v20 = vadd.f32 %v535_v15, %v528_v13  ;;  %v543_v21 = vadd.f32 %v541_v16, %v531_v14  ;;  %v618_v15 = vstv %s617_s17  ;;  %s2807_s17 = sld [smem:[#allocation17 + %s2629_s21]] }
  0x7d   : > { %v536_v22 = vadd.f32 %v534_v18, %v528_v13  ;;  %v542_v23 = vadd.f32 %v540_v19, %v531_v14 }
  0x7e   : > { %vm545_vm1 = vcmp.ge.f32.partialorder %v537_v20, 0.0  ;;  %v547_v24 = vmul.f32 0.01, %v537_v20  ;;  %vm553_vm2 = vcmp.ge.f32.partialorder %v543_v21, 0.0  ;;  %v555_v25 = vmul.f32 0.01, %v543_v21 }
  0x7f   : > { %vm544_vm3 = vcmp.ge.f32.partialorder %v536_v22, 0.0  ;;  %v546_v26 = vmul.f32 0.01, %v536_v22  ;;  %vm552_vm4 = vcmp.ge.f32.partialorder %v542_v23, 0.0  ;;  %v554_v27 = vmul.f32 0.01, %v542_v23 }
  0x80   : > { %v549_v28 = vsel %vm545_vm1, %v537_v20, %v547_v24  ;;  %v557_v29 = vsel %vm553_vm2, %v543_v21, %v555_v25 }
  0x81   : > { %551 = vst [vmem:[#allocation2 + $0x10] sm:$0x1e] %v549_v28  ;;  %v548_v30 = vsel %vm544_vm3, %v536_v22, %v546_v26  ;;  %v556_v31 = vsel %vm552_vm4, %v542_v23, %v554_v27 }
  0x82   : > { %560 = vst [vmem:[#allocation2 + $0x30] sm:$0x1e] %v557_v29 }
  0x83   : > { %550 = vst [vmem:[#allocation2 + $0x8] sm:$0x1e] %v548_v30 }
  0x84   : > { %559 = vst [vmem:[#allocation2 + $0x28] sm:$0x1e] %v556_v31 }
  0x88   : > { %v562_v36 = vld [vmem:[#allocation2 + $0x10] sm:$0x3f] }
  0x89   : > { %v564_v39 = vld [vmem:[#allocation2 + $0x30] sm:$0x3f]  ;;  %v572_v40 = vmul.f32 %v570_v32, %v562_v36  ;;  %v585_v41 = vmul.f32 %v583_v33, %v562_v36 }
  0x8a   : > { %v578_v42 = vmul.f32 %v576_v34, %v564_v39  ;;  %v592_v43 = vmul.f32 %v590_v35, %v564_v39  ;;  %v561_v44 = vld [vmem:[#allocation2 + $0x8] sm:$0x3f] }
  0x8b   : > { %v574_v45 = vadd.f32 %v572_v40, %v566_v37  ;;  %v587_v46 = vadd.f32 %v585_v41, %v568_v38  ;;  %v563_v47 = vld [vmem:[#allocation2 + $0x28] sm:$0x3f]  ;;  %v571_v48 = vmul.f32 %v570_v32, %v561_v44  ;;  %v584_v49 = vmul.f32 %v583_v33, %v561_v44 }
  0x8c   : > { %v577_v50 = vmul.f32 %v576_v34, %v563_v47  ;;  %v591_v51 = vmul.f32 %v590_v35, %v563_v47 }
  0x8d   : > { %v580_v52 = vadd.f32 %v578_v42, %v574_v45  ;;  %v594_v53 = vadd.f32 %v592_v43, %v587_v46  ;;  %v573_v54 = vadd.f32 %v571_v48, %v566_v37  ;;  %v586_v55 = vadd.f32 %v584_v49, %v568_v38 }
  0x8e   : > { %v2712_v43 = vand.u32 127, %v497_v0 }
  0x8f   : > { %vm596_vm5 = vcmp.ge.f32.partialorder %v580_v52, 0.0  ;;  %v598_v56 = vmul.f32 0.01, %v580_v52  ;;  %vm604_vm6 = vcmp.ge.f32.partialorder %v594_v53, 0.0  ;;  %v606_v57 = vmul.f32 0.01, %v594_v53 }
  0x90   : > { %v579_v58 = vadd.f32 %v577_v50, %v573_v54  ;;  %v593_v59 = vadd.f32 %v591_v51, %v586_v55  ;;  %v697_v44 = vadd.s32 256, %v2712_v43  ;;  %v725_v48 = vand.u32 15, %v2712_v43 }
  0x91   : > { %v600_v60 = vsel %vm596_vm5, %v580_v52, %v598_v56  ;;  %v608_v61 = vsel %vm604_vm6, %v594_v53, %v606_v57  ;;  %vm687_vm15 = vcmp.lt.s32.totalorder %v2712_v43, 1  ;;  %vm810_vm2 = vcmp.lt.s32.totalorder %v2712_v43, 16 }
  0x92   : > { %602 = vst [vmem:[#allocation2 + $0x10] sm:$0x1e] %v600_v60  ;;  %vm595_vm7 = vcmp.ge.f32.partialorder %v579_v58, 0.0  ;;  %v597_v62 = vmul.f32 0.01, %v579_v58  ;;  %vm603_vm8 = vcmp.ge.f32.partialorder %v593_v59, 0.0 }
  0x93   : > { %610 = vst [vmem:[#allocation2 + $0x30] sm:$0x1e] %v608_v61  ;;  %v605_v63 = vmul.f32 0.01, %v593_v59  ;;  %v2715_v45 = vadd.s32 4294967168, %v697_v44  ;;  %v763_v50 = vadd.s32 4294967295, %v725_v48 }
  0x94   : > { %v599_v2 = vsel %vm595_vm7, %v579_v58, %v597_v62  ;;  %vm1273_vm5 = vcmp.lt.s32.totalorder %v2712_v43, 127 }
  0x95   : > { %601 = vst [vmem:[#allocation2 + $0x8] sm:$0x1e] %v599_v2  ;;  %v607_v3 = vsel %vm603_vm8, %v593_v59, %v605_v63  ;;  %v732_v46 = vand.u32 15, %v2715_v45  ;;  %vm767_vm0 = vcmp.ge.s32.totalorder %v763_v50, 0  ;;  %vm957_vm8 = vcmp.lt.s32.totalorder %v2712_v43, 112 }
  0x96   : > { %609 = vst [vmem:[#allocation2 + $0x28] sm:$0x1e] %v607_v3 }
  0x97   : > { %v764_v49 = vadd.s32 4294967295, %v732_v46 }
  0x99   : > { %v612_v7 = vld [vmem:[#allocation2 + $0x10] sm:$0x3f]  ;;  %vm768_vm13 = vcmp.ge.s32.totalorder %v764_v49, 0  ;;  %vm776_vm14 = vcmp.lt.s32.totalorder %v764_v49, 16 }
  0x9a   : > { %v614_v10 = vld [vmem:[#allocation2 + $0x30] sm:$0x3f]  ;;  %v622_v11 = vmul.f32 %v620_v4, %v612_v7  ;;  %v634_v13 = vmul.f32 %v632_v9, %v612_v7  ;;  %vm2725_vm1 = vmand %vm768_vm13, %vm776_vm14  ;;  %v662_v7 = vld [vmem:[#allocation2 + $0x18] sm:$0x3f] }
  0x9b   : > { %v628_v14 = vmul.f32 %v626_v6, %v614_v10  ;;  %v640_v16 = vmul.f32 %v638_v12, %v614_v10 }
  0x9c   : > { %v624_v17 = vadd.f32 %v622_v11, %v616_v8  ;;  %v611_v18 = vld [vmem:[#allocation2 + $0x8] sm:$0x3f]  ;;  %v636_v19 = vadd.f32 %v634_v13, %v618_v15 }
  0x9d   : > { %v613_v20 = vld [vmem:[#allocation2 + $0x28] sm:$0x3f]  ;;  %v621_v21 = vmul.f32 %v620_v4, %v611_v18  ;;  %v633_v22 = vmul.f32 %v632_v9, %v611_v18  ;;  %v823_v18 = vstv %s2803_s2  ;;  %s919_s2 = sadd.s32 21, %s2629_s21 }
  0x9e   : > { %v630_v23 = vadd.f32 %v628_v14, %v624_v17  ;;  %v627_v24 = vmul.f32 %v626_v6, %v613_v20  ;;  %v639_v25 = vmul.f32 %v638_v12, %v613_v20  ;;  %v642_v26 = vadd.f32 %v640_v16, %v636_v19 }
  0x9f   : > { %v623_v27 = vadd.f32 %v621_v21, %v616_v8  ;;  %v635_v28 = vadd.f32 %v633_v22, %v618_v15  ;;  %v666_v8 = vld [vmem:[#allocation2 + $0x38] sm:$0x3f]  ;;  %v816_v15 = vstv %s2807_s17  ;;  %v1284_v17 = vadd.s32 1, %v732_v46  ;;  %s2847_s17 = sld [smem:[#allocation17 + %s906_s1]] }
  0xa0   : > { %vm644_vm9 = vcmp.ge.f32.partialorder %v630_v23, 0.0  ;;  %v646_v29 = vmul.f32 0.01, %v630_v23  ;;  %vm652_vm10 = vcmp.ge.f32.partialorder %v642_v26, 0.0  ;;  %v654_v30 = vmul.f32 0.01, %v642_v26 }
  0xa1   : > { %v629_v31 = vadd.f32 %v627_v24, %v623_v27  ;;  %v641_v32 = vadd.f32 %v639_v25, %v635_v28  ;;  %v2064_v9 = vpack.i.bf16 %v666_v8, %v662_v7  ;;  %v856_v27 = vstv %s2820_s4  ;;  %s2857_s4 = sld [smem:[#allocation17 + %s919_s2]] }
  0xa2   : > { %v648_v33 = vsel %vm644_vm9, %v630_v23, %v646_v29  ;;  %v656_v34 = vsel %vm652_vm10, %v642_v26, %v654_v30  ;;  %vm1288_vm3 = vcmp.ge.s32.totalorder %v1284_v17, 0  ;;  %vm1296_vm4 = vcmp.lt.s32.totalorder %v1284_v17, 16 }
  0xa3   : > { %650 = vst [vmem:[#allocation2 + $0x10] sm:$0x1e] %v648_v33  ;;  %vm643_vm11 = vcmp.ge.f32.partialorder %v629_v31, 0.0  ;;  %v645_v35 = vmul.f32 0.01, %v629_v31  ;;  %vm651_vm12 = vcmp.ge.f32.partialorder %v641_v32, 0.0  ;;  %vm2853_vm6 = vmand %vm1288_vm3, %vm1296_vm4 }
  0xa4   : > { %v653_v36 = vmul.f32 0.01, %v641_v32  ;;  %658 = vst [vmem:[#allocation2 + $0x30] sm:$0x1e] %v656_v34  ;;  %vm1582_vm9 = vcmask 1043456   ;;  %vm1671_vm3 = vcmask 1046532  }
  0xa5   : > { %v647_v37 = vsel %vm643_vm11, %v629_v31, %v645_v35 }
  0xa6   : > { %649 = vst [vmem:[#allocation2 + $0x8] sm:$0x1e] %v647_v37  ;;  %v655_v38 = vsel %vm651_vm12, %v641_v32, %v653_v36 }
  0xa7   : > { %657 = vst [vmem:[#allocation2 + $0x28] sm:$0x1e] %v655_v38 }
  0xaa   : > { %v2693_v39 = vld [vmem:[#allocation2 + $0x10] sm:$0x3f] }
  0xab   : > { %677 = vrot.lane.b32.xlu1 %v2693_v39, %s2374_s28  ;;  %v2697_v40 = vld [vmem:[#allocation2 + $0x30] sm:$0x3f] }
  0xac   : > { %679 = vrot.lane.b32.xlu2 %v2697_v40, %s2374_s28 }
  0xad   : > { %v2701_v41 = vld [vmem:[#allocation2 + $0x8] sm:$0x3f] }
  0xae   : > { %673 = vrot.lane.b32.xlu0 %v2701_v41, %s2374_s28  ;;  %v2705_v42 = vld [vmem:[#allocation2 + $0x28] sm:$0x3f] }
  0xb3   : > { %675 = vrot.lane.b32.xlu1 %v2705_v42, %s2374_s28  ;;  %s880_s28 = sld [smem:[#allocation17 + %s2652_s12]]  ;;  %s2376_s12 = smov 127  }
  0xb4   : > { %2055 = vrot.lane.b32.xlu2 %v2373_v1, %s3255_s24 }
  0xb9   : > { %v881_v53 = vstv %s880_s28  ;;  %s2809_s28 = sld [smem:[#allocation17 + %s828_s19]]  ;;  %s893_s19 = sadd.s32 12, %s2629_s21 }
  0xbf   : > { %v830_v16 = vstv %s2809_s28  ;;  %s932_s28 = sadd.s32 48, %s2629_s21 }
  0xdd   : > { %v2051_v47 = vpop.permute.xlu0 %2050 }
  0xde   : > { %v2052_v51 = vunpack.i.l.bf16 %v2051_v47  ;;  %v2053_v62 = vunpack.i.h.bf16 %v2051_v47 }
 0x106   : > { %v680_v61 = vpop.permute.xlu2 %679 }
 0x11d   : > { %v678_v0 = vpop.permute.xlu1 %677 }
 0x120   : > { %v674_v54 = vpop.permute.xlu0 %673 }
 0x121   : > { %v690_v55 = vsel %vm687_vm15, %v674_v54, %v678_v0  ;;  %v692_v56 = vsel %vm687_vm15, %v2052_v51, %v674_v54 }
 0x122   : > { %v2734_v57 = vsel %vm767_vm0, %v692_v56, 0.0  ;;  %v2738_v58 = vsel %vm2725_vm1, %v690_v55, 0.0 }
 0x123   : > { %v2741_v59 = vmul.f32 %v881_v53, %v2734_v57  ;;  %v2744_v60 = vmul.f32 %v881_v53, %v2738_v58  ;;  %806 = vrot.lane.b32.xlu1 %v2738_v58, %s3255_s24  ;;  %802 = vrot.lane.b32.xlu0 %v2734_v57, %s3255_s24 }
 0x125   : > { %v676_v63 = vpop.permute.xlu1 %675 }
 0x126   : > { %v691_v2 = vsel %vm687_vm15, %v676_v63, %v680_v61  ;;  %v693_v3 = vsel %vm687_vm15, %v2053_v62, %v676_v63 }
 0x127   : > { %v2755_v4 = vsel %vm767_vm0, %v693_v3, 0.0  ;;  %v2761_v6 = vsel %vm2725_vm1, %v691_v2, 0.0  ;;  %v908_v3 = vstv %s2847_s17 }
 0x128   : > { %804 = vrot.lane.b32.xlu2 %v2755_v4, %s3255_s24 }
 0x12b   : > { %1265 = vrot.lane.b32.xlu1 %v2693_v39, %s2376_s12  ;;  %808 = vrot.lane.b32.xlu0 %v2761_v6, %s3255_s24 }
 0x130   : > { %2065 = vrot.lane.b32.xlu2 %v2064_v9, %s2376_s12 }
 0x133   : > { %1267 = vrot.lane.b32.xlu1 %v2697_v40, %s2376_s12  ;;  %2060 = vrot.lane.b32.xlu0 %v2373_v1, %s3253_s29 }
 0x138   : > { %949 = vrot.lane.b32.xlu2 %v2738_v58, %s3253_s29 }
 0x13b   : > { %945 = vrot.lane.b32.xlu1 %v2734_v57, %s3253_s29  ;;  %1261 = vrot.lane.b32.xlu0 %v2701_v41, %s2376_s12 }
 0x140   : > { %951 = vrot.lane.b32.xlu2 %v2761_v6, %s3253_s29 }
 0x143   : > { %947 = vrot.lane.b32.xlu1 %v2755_v4, %s3253_s29  ;;  %1263 = vrot.lane.b32.xlu0 %v2705_v42, %s2376_s12  ;;  %s2811_s12 = sld [smem:[#allocation17 + %s841_s11]]  ;;  %s886_s11 = sadd.s32 30, %s2629_s21 }
 0x148   : > { %2070 = vrot.lane.b32.xlu2 %v2631_v5, %s3255_s24  ;;  %v2056_v5 = vpop.permute.xlu2 %2055 }
 0x149   : > { %v2058_v10 = vunpack.i.h.bf16 %v2056_v5  ;;  %v2057_v13 = vunpack.i.l.bf16 %v2056_v5  ;;  %v843_v20 = vstv %s2811_s12  ;;  %s962_s12 = sadd.s32 6, %s2629_s21 }
 0x14a   : > { %s2893_s1 = sld [smem:[#allocation17 + %s962_s12]]  ;;  %s3280_s12 = smov 112  }
 0x14b   : > { %1036 = vrot.lane.b32.xlu1 %v2693_v39, %s3255_s24  ;;  %1032 = vrot.lane.b32.xlu0 %v2701_v41, %s3255_s24 }
 0x150   : > { %1034 = vrot.lane.b32.xlu2 %v2705_v42, %s3255_s24 }
 0x153   : > { %1175 = vrot.lane.b32.xlu1 %v2701_v41, %s3253_s29  ;;  %1038 = vrot.lane.b32.xlu0 %v2697_v40, %s3255_s24  ;;  %s867_s24 = sadd.s32 45, %s2629_s21 }
 0x154   : > { %s2822_s5 = sld [smem:[#allocation17 + %s867_s24]] }
 0x155   : > { %s2838_s24 = sld [smem:[#allocation17 + %s893_s19]]  ;;  %s976_s19 = sadd.s32 15, %s2629_s21 }
 0x156   : > { %s2896_s2 = sld [smem:[#allocation17 + %s976_s19]] }
 0x158   : > { %1179 = vrot.lane.b32.xlu2 %v2693_v39, %s3253_s29 }
 0x15a   : > { %v869_v32 = vstv %s2822_s5  ;;  %s2864_s5 = sld [smem:[#allocation17 + %s932_s28]] }
 0x15b   : > { %1177 = vrot.lane.b32.xlu1 %v2705_v42, %s3253_s29  ;;  %2075 = vrot.lane.b32.xlu0 %v2064_v9, %s3253_s29  ;;  %v895_v54 = vstv %s2838_s24  ;;  %s989_s24 = sadd.s32 42, %s2629_s21 }
 0x15c   : > { %v896_v5 = vmul.f32 %v895_v54, %v2734_v57  ;;  %s2904_s28 = sld [smem:[#allocation17 + %s989_s24]]  ;;  %s1057_s24 = sadd.s32 10, %s2629_s21 }
 0x160   : > { %1181 = vrot.lane.b32.xlu2 %v2697_v40, %s3253_s29  ;;  %s2815_s29 = sld [smem:[#allocation19 + %s2629_s21]] }
 0x163   : > { %2080 = vrot.lane.b32.xlu0 %v2373_v1, %s3277_s30 }
 0x166   : > { %v668_v21 = vstv %s2815_s29  ;;  %s2844_s29 = sld [smem:[#allocation17 + %s886_s11]]  ;;  %s969_s11 = sadd.s32 33, %s2629_s21 }
 0x167   : > { %s2902_s17 = sld [smem:[#allocation17 + %s969_s11]] }
 0x168   : > { %s2965_s11 = sld [smem:[#allocation3 + %s2457_s20]] }
 0x16c   : > { %v888_v62 = vstv %s2844_s29  ;;  %s1002_s29 = sadd.s32 24, %s2629_s21 }
 0x182   : > { %v805_v11 = vpop.permute.xlu2 %804 }
 0x183   : > { %v814_v12 = vsel %vm810_vm2, %v2058_v10, %v805_v11 }
 0x184   : > { %v824_v28 = vmul.f32 %v823_v18, %v814_v12  ;;  %v844_v29 = vmul.f32 %v843_v20, %v814_v12  ;;  %v870_v45 = vmul.f32 %v869_v32, %v814_v12 }
 0x186   : > { %v848_v44 = vrot.slane %v844_v29, 1  ;;  %v874_v63 = vrot.slane %v870_v45, 2 }
 0x18a   : > { %v2840_v26 = vpop.permute.xlu2 %2065 }
 0x18b   : > { %v2067_v30 = vunpack.i.l.bf16 %v2840_v26 }
 0x195   : > { %v807_v14 = vpop.permute.xlu1 %806  ;;  %v803_v19 = vpop.permute.xlu0 %802 }
 0x196   : > { %v811_v22 = vsel %vm810_vm2, %v803_v19, %v807_v14  ;;  %v813_v23 = vsel %vm810_vm2, %v2057_v13, %v803_v19  ;;  %v934_v19 = vstv %s2864_s5  ;;  %s2909_s5 = sld [smem:[#allocation17 + %s1002_s29]] }
 0x197   : > { %v817_v24 = vmul.f32 %v816_v15, %v813_v23  ;;  %v831_v25 = vmul.f32 %v830_v16, %v813_v23  ;;  %v857_v35 = vmul.f32 %v856_v27, %v813_v23  ;;  %v818_v37 = vmul.f32 %v816_v15, %v811_v22  ;;  %s2976_s29 = sld [smem:[#allocation17 + %s1057_s24]]  ;;  %s1123_s24 = sadd.s32 13, %s2629_s21 }
 0x198   : > { %v832_v50 = vmul.f32 %v830_v16, %v811_v22  ;;  %v858_v8 = vmul.f32 %v856_v27, %v811_v22  ;;  %v889_v15 = vmul.f32 %v888_v62, %v2755_v4  ;;  %v909_v16 = vmul.f32 %v908_v3, %v2755_v4 }
 0x199   : > { %v819_v31 = vadd.f32 %v817_v24, %v668_v21  ;;  %v835_v34 = vrot.slane %v831_v25, 1  ;;  %v861_v53 = vrot.slane %v857_v35, 2  ;;  %v820_v55 = vadd.f32 %v818_v37, %v668_v21 }
 0x19a   : > { %v836_v7 = vrot.slane %v832_v50, 1  ;;  %v900_v22 = vrot.slane %v896_v5, 1  ;;  %v935_v29 = vmul.f32 %v934_v19, %v2755_v4  ;;  %v890_v4 = vmul.f32 %v888_v62, %v2761_v6 }
 0x19b   : > { %v826_v33 = vadd.f32 %v824_v28, %v819_v31  ;;  %v913_v28 = vrot.slane %v909_v16, 1  ;;  %v897_v31 = vmul.f32 %v895_v54, %v2738_v58  ;;  %v910_v35 = vmul.f32 %v908_v3, %v2761_v6 }
 0x19c   : > { %v939_v37 = vrot.slane %v935_v29, 2  ;;  %v978_v62 = vstv %s2896_s2  ;;  %v2068_v16 = vunpack.i.h.bf16 %v2840_v26  ;;  %s1050_s2 = sadd.s32 28, %s2629_s21 }
 0x19d   : > { %v2859_v38 = vpop.permute.xlu1 %1265  ;;  %v839_v46 = vadd.f32 %v835_v34, %v826_v33  ;;  %v809_v49 = vpop.permute.xlu0 %808 }
 0x19e   : > { %v1274_v47 = vsel %vm1273_vm5, %v2859_v38, %v2067_v30  ;;  %v812_v51 = vsel %vm810_vm2, %v805_v11, %v809_v49  ;;  %v921_v11 = vstv %s2857_s4  ;;  %s1015_s4 = sadd.s32 51, %s2629_s21 }
 0x19f   : > { %v2868_v0 = vsel %vm2853_vm6, %v1274_v47, 0.0  ;;  %v852_v52 = vadd.f32 %v848_v44, %v839_v46  ;;  %v825_v56 = vmul.f32 %v823_v18, %v812_v51  ;;  %v845_v61 = vmul.f32 %v843_v20, %v812_v51  ;;  %s2920_s19 = sld [smem:[#allocation17 + %s1015_s4]] }
 0x1a0   : > { %1326 = vrot.lane.b32.xlu2 %v2868_v0, %s3277_s30  ;;  %v871_v14 = vmul.f32 %v869_v32, %v812_v51  ;;  %v862_v20 = vrot.slane %v858_v8, 2  ;;  %v922_v23 = vmul.f32 %v921_v11, %v2734_v57  ;;  %v2891_v32 = vpop.permute.xlu2 %949  ;;  %v901_v46 = vrot.slane %v897_v31, 1 }
 0x1a1   : > { %v865_v2 = vadd.f32 %v861_v53, %v852_v52  ;;  %v827_v9 = vadd.f32 %v825_v56, %v820_v55  ;;  %v849_v13 = vrot.slane %v845_v61, 1  ;;  %v923_v47 = vmul.f32 %v921_v11, %v2738_v58 }
 0x1a2   : > { %v875_v27 = vrot.slane %v871_v14, 2  ;;  %v926_v57 = vrot.slane %v922_v23, 2  ;;  %v914_v52 = vrot.slane %v910_v35, 1  ;;  %v936_v53 = vmul.f32 %v934_v19, %v2761_v6 }
 0x1a3   : > { %v878_v10 = vadd.f32 %v874_v63, %v865_v2  ;;  %v840_v12 = vadd.f32 %v836_v7, %v827_v9  ;;  %v927_v56 = vrot.slane %v923_v47, 2  ;;  %v971_v8 = vstv %s2902_s17  ;;  %s2978_s17 = sld [smem:[#allocation17 + %s1050_s2]] }
 0x1a4   : > { %v940_v63 = vrot.slane %v936_v53, 2  ;;  %v991_v9 = vstv %s2904_s28  ;;  %v1004_v14 = vstv %s2909_s5  ;;  %s1070_s28 = sadd.s32 37, %s2629_s21  ;;  %s1096_s5 = sadd.s32 46, %s2629_s21 }
 0x1a5   : > { %v884_v17 = vadd.f32 %v2741_v59, %v878_v10  ;;  %v2061_v18 = vpop.permute.xlu0 %2060  ;;  %v853_v21 = vadd.f32 %v849_v13, %v840_v12  ;;  %v1283_v59 = vadd.s32 1, %v725_v48  ;;  %v1268_v10 = vpop.permute.xlu1 %1267 }
 0x1a6   : > { %v2062_v50 = vunpack.i.l.bf16 %v2061_v18  ;;  %v2063_v55 = vunpack.i.h.bf16 %v2061_v18  ;;  %v1275_v26 = vsel %vm1273_vm5, %v1268_v10, %v2068_v16 }
 0x1a7   : > { %v891_v24 = vadd.f32 %v889_v15, %v884_v17  ;;  %v866_v25 = vadd.f32 %v862_v20, %v853_v21  ;;  %vm1295_vm7 = vcmp.lt.s32.totalorder %v1283_v59, 16  ;;  %v1017_v20 = vstv %s2920_s19  ;;  %s1109_s19 = sadd.s32 4, %s2629_s21 }
 0x1a8   : > { %v958_v6 = vsel %vm957_vm8, %v2891_v32, %v2062_v50  ;;  %v952_v2 = vpop.permute.xlu2 %951  ;;  %v2951_v59 = vsel %vm2853_vm6, %v1275_v26, 0.0 }
 0x1a9   : > { %v904_v30 = vadd.f32 %v900_v22, %v891_v24  ;;  %v879_v33 = vadd.f32 %v875_v27, %v866_v25  ;;  %v959_v7 = vsel %vm957_vm8, %v952_v2, %v2063_v55  ;;  %v980_v13 = vmul.f32 %v978_v62, %v958_v6 }
 0x1aa   : > { %v973_v18 = vmul.f32 %v971_v8, %v959_v7  ;;  %v993_v19 = vmul.f32 %v991_v9, %v959_v7  ;;  %v1006_v23 = vmul.f32 %v1004_v14, %v958_v6 }
 0x1ab   : > { %v917_v34 = vadd.f32 %v913_v28, %v904_v30  ;;  %v885_v48 = vadd.f32 %v2744_v60, %v879_v33  ;;  %v984_v22 = vrot.slane %v980_v13, 1  ;;  %v1019_v28 = vmul.f32 %v1017_v20, %v959_v7 }
 0x1ac   : > { %v997_v27 = vrot.slane %v993_v19, 1  ;;  %v1010_v29 = vrot.slane %v1006_v23, 2  ;;  %v1052_v13 = vstv %s2978_s17  ;;  %s1136_s17 = sadd.s32 40, %s2629_s21 }
 0x1ad   : > { %v930_v44 = vadd.f32 %v926_v57, %v917_v34  ;;  %v1262_v45 = vpop.permute.xlu0 %1261  ;;  %v892_v49 = vadd.f32 %v890_v4, %v885_v48  ;;  %v946_v33 = vpop.permute.xlu1 %945 }
 0x1ae   : > { %v1276_v51 = vsel %vm1273_vm5, %v1262_v45, %v2859_v38  ;;  %v964_v38 = vstv %s2893_s1  ;;  %v960_v36 = vsel %vm957_vm8, %v946_v33, %v2891_v32  ;;  %s2971_s1 = sld [smem:[#allocation17 + %s2636_s23]]  ;;  %v1556_v32 = vld [vmem:[%s2612_s3] sm:$0xff]  ;;  %s1083_s23 = sadd.s32 19, %s2629_s21 }
 0x1af   : > { %v943_v60 = vadd.f32 %v939_v37, %v930_v44  ;;  %v905_v54 = vadd.f32 %v901_v46, %v892_v49  ;;  %v2916_v58 = vsel %vm1295_vm7, %v1276_v51, 0.0  ;;  %v966_v12 = vmul.f32 %v964_v38, %v958_v6  ;;  %s2982_s3 = sld [smem:[#allocation17 + %s1070_s28]] }
 0x1b0   : > { %1465 = vrot.lane.b32.xlu2 %v2916_v58, %s3280_s12  ;;  %1322 = vrot.lane.b32.xlu1 %v2916_v58, %s3277_s30  ;;  %v965_v35 = vmul.f32 %v964_v38, %v960_v36  ;;  %v979_v44 = vmul.f32 %v978_v62, %v960_v36  ;;  %v2071_v50 = vpop.permute.xlu2 %2070  ;;  %v1005_v53 = vmul.f32 %v1004_v14, %v960_v36  ;;  %s2992_s4 = sld [smem:[#allocation17 + %s1083_s23]] }
 0x1b1   : > { %v918_v61 = vadd.f32 %v914_v52, %v905_v54  ;;  %v1575_v7 = vmul.f32 %v1556_v32, %v1556_v32  ;;  %s3021_s28 = sld [smem:[#allocation17 + %s1136_s17]] }
 0x1b2   : > { %v967_v37 = vadd.f32 %v965_v35, %v943_v60  ;;  %v983_v46 = vrot.slane %v979_v44, 1 }
 0x1b3   : > { %v931_v3 = vadd.f32 %v927_v56, %v918_v61  ;;  %v2072_v56 = vunpack.i.l.bf16 %v2071_v50  ;;  %v1009_v61 = vrot.slane %v1005_v53, 2 }
 0x1b4   : > { %v1045_v62 = vstv %s2971_s1  ;;  %s1116_s1 = sadd.s32 31, %s2629_s21 }
 0x1b5   : > { %v1264_v5 = vpop.permute.xlu0 %1263  ;;  %v944_v11 = vadd.f32 %v940_v63, %v931_v3  ;;  %v948_v34 = vpop.permute.xlu1 %947  ;;  %s3015_s2 = sld [smem:[#allocation17 + %s1116_s1]]  ;;  %s1198_s1 = sadd.s32 34, %s2629_s21 }
 0x1b6   : > { %v1277_v15 = vsel %vm1273_vm5, %v1264_v5, %v1268_v10  ;;  %v961_v4 = vsel %vm957_vm8, %v948_v34, %v952_v2  ;;  %v2073_v2 = vunpack.i.h.bf16 %v2071_v50 }
 0x1b7   : > { %v968_v17 = vadd.f32 %v966_v12, %v944_v11  ;;  %v2939_v21 = vsel %vm1295_vm7, %v1277_v15, 0.0  ;;  %v972_v48 = vmul.f32 %v971_v8, %v961_v4  ;;  %v992_v47 = vmul.f32 %v991_v9, %v961_v4 }
 0x1b8   : > { %2085 = vrot.lane.b32.xlu1 %v2373_v1, %s3280_s12  ;;  %1324 = vrot.lane.b32.xlu0 %v2939_v21, %s3277_s30  ;;  %v1023_v1 = vrot.slane %v1019_v28, 2  ;;  %v1018_v55 = vmul.f32 %v1017_v20, %v961_v4  ;;  %v1035_v8 = vpop.permute.xlu2 %1034  ;;  %v1059_v11 = vstv %s2976_s29  ;;  %s3017_s29 = sld [smem:[#allocation17 + %s1123_s24]] }
 0x1b9   : > { %v975_v24 = vadd.f32 %v973_v18, %v968_v17  ;;  %1467 = vrot.lane.b32.xlu2 %v2939_v21, %s3280_s12  ;;  %v974_v45 = vadd.f32 %v972_v48, %v967_v37  ;;  %v996_v54 = vrot.slane %v992_v47, 1  ;;  %v1043_v14 = vsel %vm810_vm2, %v2073_v2, %v1035_v8 }
 0x1ba   : > { %v1022_v63 = vrot.slane %v1018_v55, 2  ;;  %v1072_v18 = vstv %s2982_s3  ;;  %v1053_v19 = vmul.f32 %v1052_v13, %v1043_v14  ;;  %s1149_s3 = sadd.s32 22, %s2629_s21 }
 0x1bb   : > { %v988_v25 = vadd.f32 %v984_v22, %v975_v24  ;;  %v987_v49 = vadd.f32 %v983_v46, %v974_v45  ;;  %s3027_s23 = sld [smem:[#allocation17 + %s1149_s3]] }
 0x1bd   : > { %v1001_v30 = vadd.f32 %v997_v27, %v988_v25  ;;  %v1000_v60 = vadd.f32 %v996_v54, %v987_v49  ;;  %v1033_v6 = vpop.permute.xlu0 %1032  ;;  %v1037_v16 = vpop.permute.xlu1 %1036  ;;  %v1073_v25 = vmul.f32 %v1072_v18, %v1043_v14 }
 0x1be   : > { %v1042_v3 = vsel %vm810_vm2, %v2072_v56, %v1033_v6  ;;  %v1040_v22 = vsel %vm810_vm2, %v1033_v6, %v1037_v16 }
 0x1bf   : > { %v1014_v31 = vadd.f32 %v1010_v29, %v1001_v30  ;;  %v1013_v38 = vadd.f32 %v1009_v61, %v1000_v60  ;;  %v1046_v12 = vmul.f32 %v1045_v62, %v1042_v3  ;;  %v1060_v15 = vmul.f32 %v1059_v11, %v1042_v3 }
 0x1c0   : > { %1328 = vrot.lane.b32.xlu1 %v2951_v59, %s3277_s30  ;;  %1469 = vrot.lane.b32.xlu0 %v2868_v0, %s3280_s12  ;;  %s1562_s30 = ssub.f32 1.0, %s2965_s11  ;;  %v1061_v34 = vmul.f32 %v1059_v11, %v1040_v22  ;;  %v1077_v48 = vrot.slane %v1073_v25, 1  ;;  %v1138_v11 = vstv %s3021_s28  ;;  %s1231_s28 = sadd.s32 25, %s2629_s21 }
 0x1c1   : > { %v2953_v57 = vadd.f32 %v1023_v1, %v1014_v31  ;;  %v1026_v10 = vadd.f32 %v1022_v63, %v1013_v38  ;;  %v1064_v26 = vrot.slane %v1060_v15, 1  ;;  %v1085_v1 = vstv %s2992_s4  ;;  %s1162_s4 = sadd.s32 49, %s2629_s21  ;;  %s3063_s3 = sld [smem:[#allocation17 + %s1231_s28]] }
 0x1c2   : > { %v1563_v51 = vstv %s1562_s30  ;;  %v1047_v31 = vmul.f32 %v1045_v62, %v1040_v22  ;;  %v1086_v4 = vmul.f32 %v1085_v1, %v1042_v3  ;;  %s3011_s30 = sld [smem:[#allocation17 + %s1109_s19]]  ;;  %v1065_v45 = vrot.slane %v1061_v34, 1 }
 0x1c3   : > { %v1564_v52 = vmul.f32 %v1563_v51, %v1556_v32  ;;  %v1048_v17 = vadd.f32 %v1046_v12, %v1026_v10  ;;  %v1118_v62 = vstv %s3015_s2  ;;  %v1125_v63 = vstv %s3017_s29  ;;  %s3051_s2 = sld [smem:[#allocation17 + %s1198_s1]]  ;;  %s1218_s29 = sadd.s32 43, %s2629_s21 }
 0x1c4   : > { %v1049_v37 = vadd.f32 %v1047_v31, %v2953_v57  ;;  %v1090_v49 = vrot.slane %v1086_v4, 2  ;;  %v1087_v57 = vmul.f32 %v1085_v1, %v1040_v22  ;;  %v1139_v16 = vmul.f32 %v1138_v11, %v2705_v42  ;;  %s3058_s17 = sld [smem:[#allocation17 + %s1218_s29]]  ;;  %s1386_s29 = sadd.s32 47, %s2629_s21 }
 0x1c5   : > { %1566 = vst [vmem:[#allocation1] ss:$2 sm:$0xff] %v1564_v52  ;;  %v1039_v20 = vpop.permute.xlu0 %1038  ;;  %v1055_v27 = vadd.f32 %v1053_v19, %v1048_v17  ;;  %v1151_v17 = vstv %s3027_s23  ;;  %v1127_v19 = vmul.f32 %v1125_v63, %v2693_v39  ;;  %v1176_v25 = vpop.permute.xlu1 %1175  ;;  %s1244_s23 = sadd.s32 52, %s2629_s21  ;;  %s3097_s28 = sld [smem:[#allocation17 + %s1386_s29]] }
 0x1c6   : > { %v1041_v28 = vsel %vm810_vm2, %v1035_v8, %v1039_v20  ;;  %v1091_v55 = vrot.slane %v1087_v57, 2  ;;  %v1126_v8 = vmul.f32 %v1125_v63, %v2701_v41 }
 0x1c7   : > { %v1054_v36 = vmul.f32 %v1052_v13, %v1041_v28  ;;  %v1068_v35 = vadd.f32 %v1064_v26, %v1055_v27  ;;  %v1074_v47 = vmul.f32 %v1072_v18, %v1041_v28  ;;  %v1120_v18 = vmul.f32 %v1118_v62, %v2697_v40 }
 0x1c8   : > { %1471 = vrot.lane.b32.xlu0 %v2951_v59, %s3280_s12  ;;  %s2999_s12 = sld [smem:[#allocation17 + %s1096_s5]]  ;;  %v1111_v60 = vstv %s3011_s30  ;;  %v1152_v26 = vmul.f32 %v1151_v17, %v2701_v41  ;;  %s1205_s30 = sadd.s32 16, %s2629_s21 }
 0x1c9   : > { %v1056_v46 = vadd.f32 %v1054_v36, %v1049_v37  ;;  %v1081_v50 = vadd.f32 %v1077_v48, %v1068_v35  ;;  %v1078_v52 = vrot.slane %v1074_v47, 1  ;;  %v1112_v6 = vmul.f32 %v1111_v60, %v2701_v41  ;;  %s3033_s5 = sld [smem:[#allocation17 + %s1162_s4]] }
 0x1ca   : > { %v1113_v12 = vmul.f32 %v1111_v60, %v2693_v39  ;;  %v1156_v1 = vrot.slane %v1152_v26, 2  ;;  %s3049_s24 = sld [smem:[#allocation17 + %s1205_s30]]  ;;  %v1153_v36 = vmul.f32 %v1151_v17, %v2693_v39  ;;  %s1360_s30 = sadd.s32 38, %s2629_s21 }
 0x1cb   : > { %v1069_v51 = vadd.f32 %v1065_v45, %v1056_v46  ;;  %v1094_v53 = vadd.f32 %v1090_v49, %v1081_v50  ;;  %s3072_s4 = sld [smem:[#allocation17 + %s1244_s23]]  ;;  %s1413_s23 = sadd.s32 14, %s2629_s21 }
 0x1cc   : > { %v2987_v9 = vld.sshfl [vmem:[#allocation1] sm:$0xff pattern:$0x75316420]  ;;  %v2989_v5 = vld.sshfl [vmem:[#allocation1 + $0x8] sm:$0xff pattern:$0x75316420] }
 0x1cd   : > { %1577 = vst [vmem:[#allocation1] ss:$2 sm:$0xff] %v1575_v7  ;;  %v1082_v56 = vadd.f32 %v1078_v52, %v1069_v51  ;;  %v1119_v7 = vmul.f32 %v1118_v62, %v2705_v42  ;;  %v1178_v45 = vpop.permute.xlu1 %1177  ;;  %v1157_v47 = vrot.slane %v1153_v36, 2  ;;  %v1200_v51 = vstv %s3051_s2 }
 0x1ce   : > { %v1098_v44 = vstv %s2999_s12  ;;  %s1191_s12 = sadd.s32 7, %s2629_s21 }
 0x1cf   : > { %v1099_v32 = vmul.f32 %v1098_v44, %v1043_v14  ;;  %v1100_v61 = vmul.f32 %v1098_v44, %v1041_v28  ;;  %v1095_v2 = vadd.f32 %v1091_v55, %v1082_v56  ;;  %v1130_v14 = vrot.slane %v1126_v8, 1  ;;  %s3043_s19 = sld [smem:[#allocation17 + %s1191_s12]] }
 0x1d0   : > { %v1164_v27 = vstv %s3033_s5  ;;  %v1131_v28 = vrot.slane %v1127_v19, 1  ;;  %v1207_v39 = vstv %s3049_s24  ;;  %v1233_v8 = vstv %s3063_s3  ;;  %s1347_s5 = sadd.s32 11, %s2629_s21  ;;  %s3079_s12 = sld [smem:[#allocation17 + %s2646_s26]] }
 0x1d1   : > { %v1103_v54 = vrot.slane %v1099_v32, 2  ;;  %v1104_v3 = vrot.slane %v1100_v61, 2  ;;  %v1165_v31 = vmul.f32 %v1164_v27, %v2705_v42  ;;  %v2076_v42 = vpop.permute.xlu0 %2075  ;;  %v1166_v49 = vmul.f32 %v1164_v27, %v2697_v40  ;;  %s3084_s1 = sld [smem:[#allocation17 + %s1347_s5]]  ;;  %s1373_s24 = sadd.s32 20, %s2629_s21 }
 0x1d2   : > { %v2077_v57 = vunpack.i.l.bf16 %v2076_v42  ;;  %v1246_v17 = vstv %s3072_s4  ;;  %s3089_s26 = sld [smem:[#allocation17 + %s1360_s30]]  ;;  %s1399_s3 = sadd.s32 5, %s2629_s21 }
 0x1d3   : > { %v1107_v38 = vadd.f32 %v1103_v54, %v1094_v53  ;;  %v1108_v13 = vadd.f32 %v1104_v3, %v1095_v2  ;;  %v1169_v4 = vrot.slane %v1165_v31, 2  ;;  %v1170_v53 = vrot.slane %v1166_v49, 2  ;;  %s1406_s4 = sadd.s32 32, %s2629_s21  ;;  %s3107_s5 = sld [smem:[#allocation17 + %s1399_s3]] }
 0x1d4   : > { %v1578_v23 = vld.sshfl [vmem:[#allocation1] sm:$0xff pattern:$0x75316420]  ;;  %v1579_v24 = vld.sshfl [vmem:[#allocation1 + $0x8] sm:$0xff pattern:$0x75316420] }
 0x1d5   : > { %v1583_v29 = vsel %vm1582_vm9, %v1578_v23, 0.0  ;;  %v1584_v30 = vsel %vm1582_vm9, %v1579_v24, 0.0  ;;  %v1114_v10 = vadd.f32 %v1112_v6, %v1107_v38  ;;  %v1115_v20 = vadd.f32 %v1113_v12, %v1108_v13  ;;  %v1180_v23 = vpop.permute.xlu2 %1179  ;;  %s1439_s30 = sadd.s32 23, %s2629_s21  ;;  %s1488_s3 = sadd.s32 35, %s2629_s21 }
 0x1d6   : > { %v1585_v33 = vadd.f32 %v1584_v30, %v1583_v29  ;;  %v1143_v24 = vrot.slane %v1139_v16, 1  ;;  %v1140_v29 = vmul.f32 %v1138_v11, %v2697_v40  ;;  %v1193_v48 = vstv %s3043_s19  ;;  %s1340_s19 = sadd.s32 29, %s2629_s21 }
 0x1d7   : > { %v1121_v15 = vadd.f32 %v1119_v7, %v1114_v10  ;;  %v1122_v30 = vadd.f32 %v1120_v18, %v1115_v20  ;;  %v1189_v37 = vsel %vm957_vm8, %v1176_v25, %v1180_v23  ;;  %v2078_v40 = vunpack.i.h.bf16 %v2076_v42  ;;  %s3087_s2 = sld [smem:[#allocation17 + %s1340_s19]] }
 0x1d8   : > { %v1144_v41 = vrot.slane %v1140_v29, 1  ;;  %v1194_v32 = vmul.f32 %v1193_v48, %v1189_v37  ;;  %v1208_v54 = vmul.f32 %v1207_v39, %v1189_v37  ;;  %v1187_v61 = vsel %vm957_vm8, %v1180_v23, %v2077_v57  ;;  %s3110_s19 = sld [smem:[#allocation17 + %s1413_s23]] }
 0x1d9   : > { %v1134_v22 = vadd.f32 %v1130_v14, %v1121_v15  ;;  %v1135_v34 = vadd.f32 %v1131_v28, %v1122_v30  ;;  %v1220_v6 = vstv %s3058_s17  ;;  %v1195_v62 = vmul.f32 %v1193_v48, %v1187_v61  ;;  %v2081_v16 = vpop.permute.xlu0 %2080  ;;  %s3092_s17 = sld [smem:[#allocation17 + %s1373_s24]] }
 0x1da   : > { %v1212_v63 = vrot.slane %v1208_v54, 1  ;;  %v1209_v12 = vmul.f32 %v1207_v39, %v1187_v61  ;;  %v1234_v13 = vmul.f32 %v1233_v8, %v1189_v37  ;;  %v1235_v27 = vmul.f32 %v1233_v8, %v1187_v61 }
 0x1db   : > { %v1148_v46 = vadd.f32 %v1144_v41, %v1135_v34  ;;  %v1335_v30 = vstv %s3079_s12  ;;  %v2083_v41 = vunpack.i.h.bf16 %v2081_v16  ;;  %v1349_v34 = vstv %s3084_s1  ;;  %s1426_s12 = sadd.s32 41, %s2629_s21  ;;  %s3116_s1 = sld [smem:[#allocation17 + %s1406_s4]] }
 0x1dc   : > { %v1213_v20 = vrot.slane %v1209_v12, 1  ;;  %v1239_v48 = vrot.slane %v1235_v27, 2  ;;  %s3120_s24 = sld [smem:[#allocation17 + %s1426_s12]]  ;;  %s1508_s4 = sadd.s32 44, %s2629_s21 }
 0x1dd   : > { %v1182_v44 = vpop.permute.xlu2 %1181  ;;  %v1161_v60 = vadd.f32 %v1157_v47, %v1148_v46  ;;  %v1342_v42 = vstv %s3087_s2  ;;  %s1452_s2 = sadd.s32 50, %s2629_s21  ;;  %s1521_s12 = sadd.s32 26, %s2629_s21 }
 0x1de   : > { %v1190_v52 = vsel %vm957_vm8, %v1178_v45, %v1182_v44  ;;  %v1188_v7 = vsel %vm957_vm8, %v1182_v44, %v2078_v40  ;;  %v1362_v44 = vstv %s3089_s26  ;;  %s3124_s26 = sld [smem:[#allocation17 + %s1439_s30]]  ;;  %v1415_v12 = vstv %s3110_s19 }
 0x1df   : > { %v1201_v56 = vmul.f32 %v1200_v51, %v1190_v52  ;;  %v1174_v38 = vadd.f32 %v1170_v53, %v1161_v60  ;;  %v1221_v3 = vmul.f32 %v1220_v6, %v1190_v52  ;;  %v1202_v10 = vmul.f32 %v1200_v51, %v1188_v7  ;;  %s3126_s29 = sld [smem:[#allocation17 + %s1452_s2]] }
 0x1e0   : > { %v1222_v18 = vmul.f32 %v1220_v6, %v1188_v7  ;;  %v1247_v25 = vmul.f32 %v1246_v17, %v1190_v52  ;;  %v1248_v36 = vmul.f32 %v1246_v17, %v1188_v7  ;;  %v1375_v39 = vstv %s3092_s17  ;;  %s1481_s17 = sadd.s32 8, %s2629_s21  ;;  %s3150_s19 = sld [smem:[#allocation17 + %s1488_s3]] }
 0x1e1   : > { %v1197_v11 = vadd.f32 %v1195_v62, %v1174_v38  ;;  %v1225_v15 = vrot.slane %v1221_v3, 1  ;;  %v1388_v60 = vstv %s3097_s28  ;;  %v1401_v7 = vstv %s3107_s5  ;;  %s1495_s28 = sadd.s32 17, %s2629_s21  ;;  %s3141_s23 = sld [smem:[#allocation17 + %s1481_s17]] }
 0x1e2   : > { %v1226_v28 = vrot.slane %v1222_v18, 1  ;;  %v1252_v53 = vrot.slane %v1248_v36, 2  ;;  %s3145_s5 = sld [smem:[#allocation17 + %s1495_s28]] }
 0x1e3   : > { %v1204_v19 = vadd.f32 %v1202_v10, %v1197_v11  ;;  %s3153_s30 = sld [smem:[#allocation17 + %s1508_s4]] }
 0x1e5   : > { %v1217_v29 = vadd.f32 %v1213_v20, %v1204_v19  ;;  %v1428_v20 = vstv %s3120_s24  ;;  %v1454_v36 = vstv %s3126_s29  ;;  %s3157_s24 = sld [smem:[#allocation17 + %s1521_s12]] }
 0x1ea   : > { %1586 = vadd.xlane.f32.xlu1 %v1585_v33  ;;  %v1147_v33 = vadd.f32 %v1143_v24, %v1134_v22  ;;  %v2082_v22 = vunpack.i.l.bf16 %v2081_v16  ;;  %v1238_v24 = vrot.slane %v1234_v13, 2  ;;  %v1408_v16 = vstv %s3116_s1  ;;  %s1534_s1 = sadd.s32 53, %s2629_s21 }
 0x1eb   : > { %s3162_s2 = sld [smem:[#allocation17 + %s1534_s1]] }
 0x1ec   : > { %v1160_v35 = vadd.f32 %v1156_v1, %v1147_v33  ;;  %v1251_v33 = vrot.slane %v1247_v25, 2  ;;  %v1416_v25 = vmul.f32 %v1415_v12, %v2916_v58 }
 0x1ee   : > { %v1173_v50 = vadd.f32 %v1169_v4, %v1160_v35  ;;  %v1230_v35 = vadd.f32 %v1226_v28, %v1217_v29  ;;  %v1441_v28 = vstv %s3124_s26 }
 0x1f0   : > { %v1196_v55 = vadd.f32 %v1194_v32, %v1173_v50  ;;  %v1243_v54 = vadd.f32 %v1239_v48, %v1230_v35  ;;  %v1420_v48 = vrot.slane %v1416_v25, 1 }
 0x1f2   : > { %v1203_v2 = vadd.f32 %v1201_v56, %v1196_v55 }
 0x1f4   : > { %v1216_v14 = vadd.f32 %v1212_v63, %v1203_v2  ;;  %v1256_v63 = vadd.f32 %v1252_v53, %v1243_v54 }
 0x1f6   : > { %v1229_v26 = vadd.f32 %v1225_v15, %v1216_v14 }
 0x1f8   : > { %v1242_v31 = vadd.f32 %v1238_v24, %v1229_v26  ;;  %v1402_v26 = vmul.f32 %v1401_v7, %v2916_v58 }
 0x1fa   : > { %v1255_v45 = vadd.f32 %v1251_v33, %v1242_v31  ;;  %v1327_v49 = vpop.permute.xlu2 %1326  ;;  %v1409_v31 = vmul.f32 %v1408_v16, %v2939_v21  ;;  %v1429_v33 = vmul.f32 %v1428_v20, %v2939_v21 }
 0x222   : > { %v1323_v23 = vpop.permute.xlu1 %1322 }
 0x223   : > { %v1332_v1 = vsel %vm810_vm2, %v2082_v22, %v1323_v23  ;;  %v1330_v32 = vsel %vm810_vm2, %v1323_v23, %v1327_v49  ;;  %v1433_v49 = vrot.slane %v1429_v33, 1 }
 0x224   : > { %v1336_v4 = vmul.f32 %v1335_v30, %v1332_v1  ;;  %v1350_v46 = vmul.f32 %v1349_v34, %v1332_v1  ;;  %v1376_v56 = vmul.f32 %v1375_v39, %v1332_v1  ;;  %v1337_v6 = vmul.f32 %v1335_v30, %v1330_v32 }
 0x225   : > { %v1351_v2 = vmul.f32 %v1349_v34, %v1330_v32  ;;  %v1377_v23 = vmul.f32 %v1375_v39, %v1330_v32  ;;  %v1455_v39 = vmul.f32 %v1454_v36, %v2939_v21  ;;  %v1403_v32 = vmul.f32 %v1401_v7, %v2868_v0 }
 0x226   : > { %v1338_v57 = vadd.f32 %v1336_v4, %v1255_v45  ;;  %v1354_v55 = vrot.slane %v1350_v46, 1  ;;  %v1380_v8 = vrot.slane %v1376_v56, 2  ;;  %v1339_v13 = vadd.f32 %v1337_v6, %v1256_v63 }
 0x227   : > { %v1355_v22 = vrot.slane %v1351_v2, 1  ;;  %v1381_v4 = vrot.slane %v1377_v23, 2  ;;  %v1497_v56 = vstv %s3145_s5  ;;  %v1459_v6 = vrot.slane %v1455_v39, 2 }
 0x228   : > { %v1490_v2 = vstv %s3150_s19  ;;  %s3281_s19 = sshll.u32 %s2606_s0, 3 }
 0x22a   : > { %v3103_v37 = vpop.permute.xlu1 %2085  ;;  %v1325_v47 = vpop.permute.xlu0 %1324 }
 0x22b   : > { %v1333_v50 = vsel %vm810_vm2, %v2083_v41, %v1325_v47  ;;  %v1466_v41 = vpop.permute.xlu2 %1465 }
 0x22c   : > { %v1343_v51 = vmul.f32 %v1342_v42, %v1333_v50  ;;  %v1363_v52 = vmul.f32 %v1362_v44, %v1333_v50  ;;  %v1389_v62 = vmul.f32 %v1388_v60, %v1333_v50 }
 0x22e   : > { %v1345_v40 = vadd.f32 %v1343_v51, %v1338_v57  ;;  %v1367_v61 = vrot.slane %v1363_v52, 1  ;;  %v1393_v18 = vrot.slane %v1389_v62, 2  ;;  %v1430_v51 = vmul.f32 %v1428_v20, %v2951_v59 }
 0x230   : > { %v1358_v38 = vadd.f32 %v1354_v55, %v1345_v40  ;;  %v1483_v55 = vstv %s3141_s23  ;;  %s1896_s23 = sshll.u32 %s2457_s20, 3  ;;  %s1680_s20 = scalar_lea.sflag [#allocation5], %s2606_s0 }
 0x231   : > { %s1691_s12 = scalar_lea.hbm %s3251_s10, %s1896_s23 }
 0x232   : > { %v1329_v3 = vpop.permute.xlu1 %1328  ;;  %v1371_v10 = vadd.f32 %v1367_v61, %v1358_v38  ;;  %v3135_v19 = vpop.permute.xlu0 %1469  ;;  %v1443_v61 = vmul.f32 %v1441_v28, %v2868_v0 }
 0x233   : > { %v1331_v11 = vsel %vm810_vm2, %v1325_v47, %v1329_v3  ;;  %v1417_v47 = vmul.f32 %v1415_v12, %v2868_v0  ;;  %v1479_v21 = vsel %vm957_vm8, %v1466_v41, %v3135_v19  ;;  %v1468_v38 = vpop.permute.xlu2 %1467  ;;  %v1510_v3 = vstv %s3153_s30  ;;  %s492_s30 = scalar_lea.vmem [#allocation21], %s3281_s19 }
 0x234   : > { %v1344_v14 = vmul.f32 %v1342_v42, %v1331_v11  ;;  %v1364_v15 = vmul.f32 %v1362_v44, %v1331_v11  ;;  %v1384_v17 = vadd.f32 %v1380_v8, %v1371_v10  ;;  %v1390_v1 = vmul.f32 %v1388_v60, %v1331_v11  ;;  %s1693_s1 = sshll.u32 %s492_s30, 4  ;;  %s1694_s1 = int_to_ptr.vmem [resolvable:$true] %s1693_s1 }
 0x235   : > { %v1442_v42 = vmul.f32 %v1441_v28, %v2916_v58  ;;  %v1410_v58 = vmul.f32 %v1408_v16, %v2951_v59  ;;  %v1421_v40 = vrot.slane %v1417_v47, 1  ;;  %v1484_v10 = vmul.f32 %v1483_v55, %v1479_v21 }
 0x236   : > { %v1346_v24 = vadd.f32 %v1344_v14, %v1339_v13  ;;  %v1397_v27 = vadd.f32 %v1393_v18, %v1384_v17  ;;  %v1368_v30 = vrot.slane %v1364_v15, 1  ;;  %v1394_v46 = vrot.slane %v1390_v1, 2 }
 0x237   : > { %v1446_v52 = vrot.slane %v1442_v42, 2  ;;  %v1498_v11 = vmul.f32 %v1497_v56, %v1479_v21  ;;  %v1434_v12 = vrot.slane %v1430_v51, 1  ;;  %v1456_v13 = vmul.f32 %v1454_v36, %v2951_v59 }
 0x238   : > { %v1359_v29 = vadd.f32 %v1355_v22, %v1346_v24  ;;  %v1404_v34 = vadd.f32 %v1402_v26, %v1397_v27  ;;  %v1523_v15 = vstv %s3157_s24  ;;  %v2087_v0 = vunpack.i.l.bf16 %v3103_v37  ;;  %s1695_s24 = sshll.u32 %s1691_s12, 4  ;;  %s1696_s24 = int_to_ptr.hbm [resolvable:$true] %s1695_s24 }
 0x239   : > { %v1447_v20 = vrot.slane %v1443_v61, 2  ;;  %v2088_v22 = vunpack.i.h.bf16 %v3103_v37  ;;  %v1536_v24 = vstv %s3162_s2  ;;  %v1502_v25 = vrot.slane %v1498_v11, 1  ;;  %s2274_s2 = sshra.s32 %s1696_s24, 4  ;;  %s2275_s2 = int_to_ptr.hbm [resolvable:$true] %s2274_s2 }
 0x23a   : > { %v1372_v35 = vadd.f32 %v1368_v30, %v1359_v29  ;;  %v1411_v44 = vadd.f32 %v1409_v31, %v1404_v34  ;;  %v1472_v54 = vpop.permute.xlu0 %1471  ;;  %v1477_v26 = vsel %vm957_vm8, %v3135_v19, %v2087_v0  ;;  %v1524_v27 = vmul.f32 %v1523_v15, %v1479_v21  ;;  %p2281_p12 = scmp.lt.s32.totalorder %s2275_s2, %s3251_s10 }
 0x23b   : > { %v1480_v7 = vsel %vm957_vm8, %v1468_v38, %v1472_v54  ;;  %v1460_v59 = vrot.slane %v1456_v13, 2  ;;  %v1478_v30 = vsel %vm957_vm8, %v1472_v54, %v2088_v22  ;;  %v1485_v34 = vmul.f32 %v1483_v55, %v1477_v26 }
 0x23c   : > { %v1385_v45 = vadd.f32 %v1381_v4, %v1372_v35  ;;  %v1424_v50 = vadd.f32 %v1420_v48, %v1411_v44  ;;  %v1491_v17 = vmul.f32 %v1490_v2, %v1480_v7  ;;  %v1511_v18 = vmul.f32 %v1510_v3, %v1480_v7 }
 0x23d   : > { %v1537_v33 = vmul.f32 %v1536_v24, %v1480_v7  ;;  %v1499_v37 = vmul.f32 %v1497_v56, %v1477_v26  ;;  %v1528_v36 = vrot.slane %v1524_v27, 2  ;;  %v1492_v48 = vmul.f32 %v1490_v2, %v1478_v30 }
 0x23e   : > { %v1398_v57 = vadd.f32 %v1394_v46, %v1385_v45  ;;  %v1437_v53 = vadd.f32 %v1433_v49, %v1424_v50  ;;  %v1515_v31 = vrot.slane %v1511_v18, 1  ;;  %v1512_v42 = vmul.f32 %v1510_v3, %v1478_v30 }
 0x23f   : > { %v1541_v44 = vrot.slane %v1537_v33, 2  ;;  %v1503_v45 = vrot.slane %v1499_v37, 1  ;;  %v1525_v46 = vmul.f32 %v1523_v15, %v1477_v26  ;;  %v1538_v50 = vmul.f32 %v1536_v24, %v1478_v30 }
 0x240   : > { %v1405_v60 = vadd.f32 %v1403_v32, %v1398_v57  ;;  %v1450_v62 = vadd.f32 %v1446_v52, %v1437_v53  ;;  %v1516_v39 = vrot.slane %v1512_v42, 1  ;;  %v1569_v56 = vrot.slane %v2987_v9, 7 }
 0x241   : > { %v1529_v57 = vrot.slane %v1525_v46, 2  ;;  %v1542_v52 = vrot.slane %v1538_v50, 2  ;;  %v1570_v61 = vrot.slane %v2989_v5, 7  ;;  %vm1670_vm2 = vcmask 1042432  }
 0x242   : > { %v1412_v63 = vadd.f32 %v1410_v58, %v1405_v60  ;;  %v1463_v8 = vadd.f32 %v1459_v6, %v1450_v62  ;;  %v1559_v60 = vstv %s2965_s11  ;;  %vm1672_vm4 = vmor %vm1670_vm2, %vm1671_vm3 }
 0x244   : > { %v1425_v14 = vadd.f32 %v1421_v40, %v1412_v63  ;;  %v1486_v16 = vadd.f32 %v1484_v10, %v1463_v8 }
 0x246   : > { %v1438_v23 = vadd.f32 %v1434_v12, %v1425_v14  ;;  %v1493_v28 = vadd.f32 %v1491_v17, %v1486_v16 }
 0x248   : > { %v1451_v29 = vadd.f32 %v1447_v20, %v1438_v23  ;;  %v1506_v1 = vadd.f32 %v1502_v25, %v1493_v28 }
 0x24a   : > { %v1464_v41 = vadd.f32 %v1460_v59, %v1451_v29  ;;  %v1519_v4 = vadd.f32 %v1515_v31, %v1506_v1 }
 0x24c   : > { %v1487_v35 = vadd.f32 %v1485_v34, %v1464_v41  ;;  %v1532_v19 = vadd.f32 %v1528_v36, %v1519_v4 }
 0x24e   : > { %v1494_v47 = vadd.f32 %v1492_v48, %v1487_v35  ;;  %v1545_v49 = vadd.f32 %v1541_v44, %v1532_v19 }
 0x250   : > { %v1507_v43 = vadd.f32 %v1503_v45, %v1494_v47  ;;  %v1549_v32 = vrot.slane %v1545_v49, 7 }
 0x252   : > { %v1520_v58 = vadd.f32 %v1516_v39, %v1507_v43  ;;  %1553 = vst [vmem:[#allocation2 + $0x8] sm:$0x1e] %v1549_v32 }
 0x254   : > { %v1533_v51 = vadd.f32 %v1529_v57, %v1520_v58 }
 0x256   : > { %v1546_v53 = vadd.f32 %v1542_v52, %v1533_v51 }
 0x258   : > { %v1550_v54 = vrot.slane %v1546_v53, 7 }
 0x259   : > { %v1557_v55 = vld [vmem:[#allocation2 + $0x8] sm:$0x1e] }
 0x25a   : > { %1554 = vst [vmem:[#allocation2 + $0x10] sm:$0x1e] %v1550_v54  ;;  %v1560_v21 = vmul.f32 %v1559_v60, %v1557_v55 }
 0x25c   : > { %v3188_v40 = vadd.f32 %v1569_v56, %v1560_v21 }
 0x25d   : > { %v1587_v38 = vpop.xlane.xlu1 %1586 }
 0x25e   : > { %v1609_v63 = vmul.f32 %v3188_v40, %v3188_v40  ;;  %v1588_v2 = vrot.slane %v1587_v38, 4 }
 0x260   : > { %v1589_v7 = vadd.f32 %v1588_v2, %v1587_v38  ;;  %v1613_v10 = vrot.slane %v1609_v63, 1 }
 0x261   : > { %v1558_v6 = vld [vmem:[#allocation2 + $0x10] sm:$0x1e] }
 0x262   : > { %v1561_v62 = vmul.f32 %v1559_v60, %v1558_v6  ;;  %v1590_v9 = vrot.slane %v1589_v7, 2  ;;  %v1617_v13 = vsel %vm1582_vm9, %v1613_v10, 0.0 }
 0x264   : > { %v3193_v3 = vadd.f32 %v1570_v61, %v1561_v62  ;;  %v1591_v12 = vadd.f32 %v1590_v9, %v1589_v7 }
 0x266   : > { %v1610_v8 = vmul.f32 %v3193_v3, %v3193_v3  ;;  %v1592_v14 = vrot.slane %v1591_v12, 1 }
 0x268   : > { %v1614_v11 = vrot.slane %v1610_v8, 1  ;;  %v1593_v0 = vadd.f32 %v1592_v14, %v1591_v12 }
 0x26a   : > { %v1618_v5 = vsel %vm1582_vm9, %v1614_v11, 0.0  ;;  %1897 = vpush %v1593_v0 }
 0x26b   : > { %v1619_v15 = vadd.f32 %v1618_v5, %v1617_v13 }
 0x26d   : > { %1620 = vadd.xlane.f32.xlu2 %v1619_v15 }
 0x29b   : > { %s1898_s21 = spop %1897 }
 0x29c   : > { %v1595_v16 = vstv %s1898_s21  ;;  %s2276_s21 = scalar_lea.hbm %s2275_s2, 8 }
 0x29d   : > { %2089 = vrsqrt.f32 %v1595_v16  ;;  %vm1603_vm10 = vcmp.eq.f32.partialorder %v1595_v16, inf  ;;  %v1606_v26 = vand.u32 2147483648, %v1595_v16  ;;  %vm1605_vm11 = vcmp.eq.f32.partialorder %v1595_v16, 0.0  ;;  %p2277_p1 = scmp.ne.s32.totalorder %s2275_s2, %s2276_s21 }
 0x29f   : > { %p2278_p3 = pnand %p2277_p1, %p2539_p13 }
 0x2a1   : > { %p2279_p4 = pneg %p2278_p3 }
 0x2a3   : > { %v2090_v17 = vpop.eup %2089 }
 0x2a4   : > { %v1597_v18 = vmul.f32 %v2090_v17, %v1595_v16 }
 0x2a6   : > { %v1598_v20 = vmul.f32 %v2090_v17, %v1597_v18 }
 0x2a8   : > { %v1599_v22 = vmul.f32 0.5, %v1598_v20 }
 0x2aa   : > { %v1600_v23 = vsub.f32 1.5, %v1599_v22 }
 0x2ac   : > { %v1601_v24 = vmul.f32 %v2090_v17, %v1600_v23 }
 0x2ae   : > { %v1602_v25 = vmul.f32 %v1601_v24, %v1595_v16 }
 0x2b0   : > { %v1604_v27 = vsel %vm1603_vm10, %v1595_v16, %v1602_v25 }
 0x2b1   : > { %v1607_v28 = vsel %vm1605_vm11, %v1606_v26, %v1604_v27 }
 0x2b2   : > { %1899 = vpush %v1607_v28 }
 0x2e0   : > { %v1621_v59 = vpop.xlane.xlu2 %1620 }
 0x2e1   : > { %v1622_v29 = vrot.slane %v1621_v59, 4 }
 0x2e3   : > { %v1623_v30 = vadd.f32 %v1622_v29, %v1621_v59  ;;  %s3199_s11 = spop %1899 }
 0x2e5   : > { %v1624_v1 = vrot.slane %v1623_v30, 2 }
 0x2e7   : > { %v1625_v31 = vadd.f32 %v1624_v1, %v1623_v30 }
 0x2e9   : > { %v1626_v33 = vrot.slane %v1625_v31, 1 }
 0x2eb   : > { %v1627_v41 = vadd.f32 %v1626_v33, %v1625_v31 }
 0x2ed   : > { %1901 = vpush %v1627_v41 }
 0x31e   : > { %s1902_s26 = spop %1901 }
 0x31f   : > { %v1629_v34 = vstv %s1902_s26 }
 0x320   : > { %2091 = vrsqrt.f32 %v1629_v34  ;;  %vm1637_vm12 = vcmp.eq.f32.partialorder %v1629_v34, inf  ;;  %v1640_v44 = vand.u32 2147483648, %v1629_v34  ;;  %vm1639_vm13 = vcmp.eq.f32.partialorder %v1629_v34, 0.0 }
 0x326   : > { %v2092_v37 = vpop.eup %2091 }
 0x327   : > { %v1631_v36 = vmul.f32 %v2092_v37, %v1629_v34 }
 0x329   : > { %v1632_v4 = vmul.f32 %v2092_v37, %v1631_v36 }
 0x32b   : > { %v1633_v35 = vmul.f32 0.5, %v1632_v4 }
 0x32d   : > { %v1634_v48 = vsub.f32 1.5, %v1633_v35 }
 0x32f   : > { %v1635_v42 = vmul.f32 %v2092_v37, %v1634_v48 }
 0x331   : > { %v1636_v19 = vmul.f32 %v1635_v42, %v1629_v34 }
 0x333   : > { %v1638_v45 = vsel %vm1637_vm12, %v1629_v34, %v1636_v19 }
 0x334   : > { %v1641_v46 = vsel %vm1639_vm13, %v1640_v44, %v1638_v45 }
 0x335   : > { %1903 = vpush %v1641_v46 }
 0x366   : > { %s1904_s29 = spop %1903 }
 0x367   : > { %s1643_s17 = sadd.f32 1e-05, %s1904_s29  ;;  %s2280_s29 = scalar_lea.hbm %s3251_s10, 16 }
 0x368   : > { %p2282_p8 = scmp.lt.s32.totalorder %s2280_s29, %s2276_s21 }
 0x369   : > { %v1644_v47 = vstv %s1643_s17 }
 0x36a   : > { %2093 = vrcp.f32 %v1644_v47  ;;  %v1656_v50 = vand.u32 2147483648, %v1644_v47  ;;  %v1654_v57 = vand.u32 2147483647, %v1644_v47  ;;  %vm1650_vm15 = vweird.f32 %v1644_v47  ;;  %p2283_p7 = por %p2282_p8, %p2281_p12 }
 0x36c   : > { %v1657_v51 = vor.u32 1.1754944e-38, %v1656_v50  ;;  %vm1655_vm1 = vcmp.eq.f32.partialorder %v1654_v57, 8.507059e+37  ;;  %p2284_p9 = pnand %p2283_p7, %p2279_p4 }
 0x370   : > { %v2094_v49 = vpop.eup %2093 }
 0x371   : > { %v1646_v43 = vmul.f32 %v2094_v49, %v1644_v47  ;;  %vm1651_vm14 = vweird.f32 %v2094_v49 }
 0x372   : > { %vm1652_vm0 = vmor %vm1650_vm15, %vm1651_vm14 }
 0x373   : > { %v1647_v39 = vsub.f32 1.0, %v1646_v43 }
 0x375   : > { %v1648_v32 = vmul.f32 %v2094_v49, %v1647_v39 }
 0x377   : > { %v1649_v58 = vadd.f32 %v2094_v49, %v1648_v32 }
 0x379   : > { %v1653_v52 = vsel %vm1652_vm0, %v2094_v49, %v1649_v58 }
 0x37a   : > { %v1658_v53 = vsel %vm1655_vm1, %v1657_v51, %v1653_v52 }
 0x37b   : > { %1905 = vpush %v1658_v53 }
 0x3ac   : > { %s1906_s28 = spop %1905 }
 0x3ad   : > { %s1660_s3 = smul.f32 %s1906_s28, %s3199_s11 }
 0x3af   : > { %v1661_v54 = vstv %s1660_s3 }
 0x3b0   : > { %v1663_v60 = vmul.f32 %v1661_v54, %v3193_v3  ;;  %v1662_v55 = vmul.f32 %v1661_v54, %v3188_v40 }
 0x3b2   : > { %v1666_v56 = vrot.slane %v1663_v60, 4 }
 0x3b4   : > { %v1667_v21 = vsel %vm1582_vm9, %v1662_v55, %v1666_v56  ;;  %v1668_v61 = vsel %vm1582_vm9, %v1666_v56, %v1662_v55 }
 0x3b5   : > { %v1888_v6 = vrot.slane %v1667_v21, 9  ;;  %v1889_v38 = vrot.slane %v1668_v61, 9 }
 0x3b7   : > { %v1676_v62 = vsel %vm1672_vm4, %v1888_v6, %v1889_v38 }
 0x3b8   : > { %1678 = vst [vmem:[%s492_s30] sm:$0xff] %v1676_v62 }
 0x3b9   : > { %2287 = shalt.err (!%p2284_p9)
}
 0x3ba   : > { %1945 = dma.vmem_to_hbm [thread:$0]  (%p2539_p13), %s1694_s1, 128, %s1696_s24, %s1680_s20  }
 0x3bb PF: > { %s1707_s0 = sand.u32 1, %s2350_s13   ;;  %p3282_p10 = scmp.ge.s32.totalorder %s2362_s16, 2 }
 0x3bc   : > { %s1708_s3 = scalar_lea.sflag [#allocation5], %s1707_s0 }
 0x3bd   : > { %p1980_p11 = pnand %p3282_p10, %p2544_p5 }
 0x3bf   : > { %p1981_p0 = pneg %p1980_p11 }
 0x3c1   : > { %2345 = dma.done.wait (%p1981_p0), %s1708_s3, 128  }
 0x3c2   : > { %2347 = vsyncadd (%p1981_p0), %s1708_s3, 4294967168  ;;  %p29_p2 = scmp.ge.s32.totalorder %s2519_s27, 4   ;;  %s3283_s13 = smov %s2354_s14 }
 0x3c3   : > { %s3284_s14 = smov %s2358_s15  ;;  %s3285_s15 = smov %s2531_s18 }
 0x3c4   : > { %s3286_s16 = smov %s2519_s27  ;;  %31 = sbr.rel (!%p29_p2) target bundleno = 18 (0x12), region = 148 }
 0x3c9   :  { %1714 = vsyncpa [#allocation4], 1 }
 0x3ca   :  { %1716 = vsyncpa [#allocation4 + $0x1], 1 }
 0x3cb   :  { %1717 = vsyncpa [#allocation5], 1 }
 0x3cc   :  { %1719 = vsyncpa [#allocation5 + $0x1], 1 }
 0x3cd   :  { %1720 = vsyncpa [#allocation6], 1 }
 0x3ce   :  { %1722 = vsyncpa [#allocation6 + $0x1], 1 }
 0x3cf   :  { %1723 = vsyncpa [#allocation12], 1 }
 0x3d0   :  { %1724 = vsyncpa [#allocation18], 1 }
 0x3d1   :  { %1725 = vsyncpa [#allocation7], 1 }
 0x3d2   :  { %1727 = vsyncpa [#allocation7 + $0x1], 1 }
 0x3d3   :  { %1728 = vsyncpa [#allocation9], 1 }
 0x3d4   :  { %1729 = vsyncpa [#allocation16], 1 }

</bundles_post_ra>
